<compile_context>
chip_gen: v7x
topology: tpu7x:2x2x1
jax: 0.10.0
libtpu: 0.0.40
codegen_flags: <defaults>
</compile_context>

<pallas_src>
import functools

import jax
import jax.numpy as jnp
from jax.experimental import pallas as pl
from jax.experimental.pallas import tpu as pltpu


def _round_up(n, m):
    return ((n + m - 1) // m) * m


def _pick_time_chunk(T, max_chunk=32):
    for c in range(min(T, max_chunk), 0, -1):
        if T % c == 0:
            return c
    return T


def lstm_attn_kernel(x_ref, w_ih_ref, w_hh_ref, b_ref, attn_w_ref,
                     attn_b_ref, fc_w_ref, fc_b_ref, out_ref, xg_ref,
                     *, t_chunk):
    """Fused LSTM + online-softmax attention + final linear for one batch tile.

    x_ref    : (T, TB, Ip)   time-major padded input tile (f32)
    w_ih_ref : (Ip, 4*Hp)    pre-transposed, gate-blocked [i|f|g|o] (f32/bf16)
    w_hh_ref : (Hp, 4*Hp)    pre-transposed, gate-blocked (f32/bf16)
    b_ref    : (1, 4*Hp)     combined bias b_ih + b_hh, gate-blocked (f32)
    attn_w   : (1, Hp)       attention vector (f32)
    attn_b   : (1,)          SMEM scalar
    fc_w_ref : (Hp, Op)      pre-transposed final linear (f32)
    fc_b_ref : (1, Op)
    out_ref  : (TB, Op)
    xg_ref   : (t_chunk*TB, 4*Hp) f32 VMEM scratch for one chunk's x @ W_ih.
    """
    f32 = jnp.float32
    T, TB, _Ip = x_ref.shape
    Hp = w_hh_ref.shape[0]
    cdt = w_ih_ref.dtype                     # matmul operand dtype (f32 / bf16)

    bias = b_ref[...]                        # (1, 4Hp)
    attn_w = attn_w_ref[...]                 # (1, Hp)
    attn_b = attn_b_ref[0]                   # SMEM scalar
    n_chunks = T // t_chunk

    def step(ti, carry):
        h, c, m, l, acc = carry
        # Timestep ti of the current chunk: sublane-aligned slab (TB % 8 == 0).
        row = pl.multiple_of(ti * TB, TB)
        g = xg_ref[pl.ds(row, TB), :]                                   # (TB, 4Hp)
        g = g + jnp.dot(h.astype(cdt), w_hh_ref[...],
                        preferred_element_type=f32)
        # Gate-blocked layout: each gate is a 128-lane-aligned slab.
        i_g = jax.nn.sigmoid(g[:, 0 * Hp:1 * Hp])
        f_g = jax.nn.sigmoid(g[:, 1 * Hp:2 * Hp])
        g_g = jnp.tanh(g[:, 2 * Hp:3 * Hp])
        o_g = jax.nn.sigmoid(g[:, 3 * Hp:4 * Hp])
        c = f_g * c + i_g * g_g
        h = o_g * jnp.tanh(c)
        # Online softmax over time, fused with the recurrence
        # (VPU multiply + XLU lane reduce instead of an N=1 MXU matmul).
        s = jnp.sum(h * attn_w, axis=-1, keepdims=True) + attn_b        # (TB, 1)
        m_new = jnp.maximum(m, s)
        alpha = jnp.exp(m - m_new)
        p = jnp.exp(s - m_new)
        l = alpha * l + p
        acc = alpha * acc + p * h
        return h, c, m_new, l, acc

    def chunk_body(ci, carry):
        start = ci * t_chunk
        if not isinstance(start, int):
            start = pl.multiple_of(start, t_chunk)
        x_c = x_ref[pl.ds(start, t_chunk)]                              # (Tc, TB, Ip)
        # (Tc, TB, Ip) -> (Tc*TB, Ip) is layout-neutral since TB % 8 == 0.
        xg_ref[...] = jnp.dot(
            x_c.reshape(t_chunk * TB, x_c.shape[-1]).astype(cdt),
            w_ih_ref[...], preferred_element_type=f32) + bias
        return jax.lax.fori_loop(0, t_chunk, step, carry,
                                 unroll=min(8, t_chunk))

    carry = (jnp.zeros((TB, Hp), f32),                 # h
             jnp.zeros((TB, Hp), f32),                 # c
             jnp.full((TB, 1), -jnp.inf, f32),         # running max
             jnp.zeros((TB, 1), f32),                  # running denom
             jnp.zeros((TB, Hp), f32))                 # context accumulator
    if n_chunks == 1:
        carry = chunk_body(0, carry)
    else:
        carry = jax.lax.fori_loop(0, n_chunks, chunk_body, carry)
    _, _, _, l, acc = carry

    context = acc / l                                                    # (TB, Hp)
    # Final linear (dropout is identity in eval mode).
    out = jnp.dot(context, fc_w_ref[...], preferred_element_type=f32)
    out_ref[...] = (out + fc_b_ref[...]).astype(out_ref.dtype)


def _prepare_params(params, H, Hp, Ip, Op, matmul_dtype):
    """Pad / pre-transpose PyTorch-layout weights into kernel layout."""
    f32 = jnp.float32
    I = params["w_ih"].shape[1]
    O = params["fc_w"].shape[0]

    def pad_gate_weight(w, in_dim, in_pad):       # (4H, in_dim) -> (in_pad, 4Hp)
        w4 = w.reshape(4, H, in_dim).astype(f32)
        wp = jnp.zeros((4, Hp, in_pad), f32).at[:, :H, :in_dim].set(w4)
        return wp.transpose(2, 0, 1).reshape(in_pad, 4 * Hp)

    w_ih_p = pad_gate_weight(params["w_ih"], I, Ip).astype(matmul_dtype)
    w_hh_p = pad_gate_weight(params["w_hh"], H, Hp).astype(matmul_dtype)

    b4 = params["b"].reshape(4, H).astype(f32)
    b_p = jnp.zeros((4, Hp), f32).at[:, :H].set(b4).reshape(1, 4 * Hp)

    attn_w_p = jnp.zeros((1, Hp), f32).at[:, :H].set(params["attn_w"].astype(f32))
    attn_b_p = params["attn_b"].astype(f32).reshape(1)

    fc_w_p = jnp.zeros((Hp, Op), f32).at[:H, :O].set(params["fc_w"].astype(f32).T)
    fc_b_p = jnp.zeros((1, Op), f32).at[:, :O].set(params["fc_b"].astype(f32))
    return w_ih_p, w_hh_p, b_p, attn_w_p, attn_b_p, fc_w_p, fc_b_p


def lstm_attention_forward(x, params, *, matmul_dtype=jnp.float32):
    B, T, I = x.shape
    H = params["w_hh"].shape[1]
    O = params["fc_w"].shape[0]

    Hp = _round_up(H, 128)       # lane-aligned gates
    Ip = _round_up(I, 128)
    Op = _round_up(O, 128)       # lane-dense output store
    Bp = _round_up(B, 8)         # sublane-aligned batch
    TB = min(Bp, 128)            # batch tile per grid step / TensorCore
    Bp = _round_up(Bp, TB)
    Tc = _pick_time_chunk(T)     # time chunk for the x @ W_ih precompute

    # Time-major, zero-padded input (host-side transpose/pad; padding does not
    # change the math: padded lanes / rows stay exactly zero through the LSTM).
    x_tm = jnp.transpose(x.astype(jnp.float32), (1, 0, 2))               # (T, B, I)
    x_p = jnp.pad(x_tm, ((0, 0), (0, Bp - B), (0, Ip - I)))

    (w_ih_p, w_hh_p, b_p, attn_w_p, attn_b_p,
     fc_w_p, fc_b_p) = _prepare_params(params, H, Hp, Ip, Op, matmul_dtype)

    mm_bytes = jnp.dtype(matmul_dtype).itemsize
    vmem_est = (
        2 * T * TB * Ip * 4                      # x block (double buffered)
        + 2 * (Ip + Hp) * 4 * Hp * mm_bytes      # w_ih + w_hh
        + 2 * (Hp * Op + 4 * Hp + Hp + Op + TB * Op) * 4
        + Tc * TB * 4 * Hp * 4                   # xg scratch
    )
    vmem_limit = int(min(48 * 1024 * 1024, max(16 * 1024 * 1024, 2 * vmem_est)))

    kernel = functools.partial(lstm_attn_kernel, t_chunk=Tc)
    out_p = pl.pallas_call(
        kernel,
        out_shape=jax.ShapeDtypeStruct((Bp, Op), jnp.float32),
        grid_spec=pltpu.PrefetchScalarGridSpec(
            num_scalar_prefetch=0,
            grid=(Bp // TB,),
            in_specs=[
                pl.BlockSpec((T, TB, Ip), lambda b: (0, b, 0)),      # x (time-major)
                pl.BlockSpec((Ip, 4 * Hp), lambda b: (0, 0)),        # w_ih
                pl.BlockSpec((Hp, 4 * Hp), lambda b: (0, 0)),        # w_hh
                pl.BlockSpec((1, 4 * Hp), lambda b: (0, 0)),         # bias
                pl.BlockSpec((1, Hp), lambda b: (0, 0)),             # attn_w
                pl.BlockSpec(memory_space=pltpu.MemorySpace.SMEM),   # attn_b scalar
                pl.BlockSpec((Hp, Op), lambda b: (0, 0)),            # fc_w
                pl.BlockSpec((1, Op), lambda b: (0, 0)),             # fc_b
            ],
            out_specs=pl.BlockSpec((TB, Op), lambda b: (b, 0)),
            scratch_shapes=[pltpu.VMEM((Tc * TB, 4 * Hp), jnp.float32)],
        ),
        compiler_params=pltpu.CompilerParams(
            dimension_semantics=("parallel",),
            vmem_limit_bytes=vmem_limit,
        ),
    )(x_p, w_ih_p, w_hh_p, b_p, attn_w_p, attn_b_p, fc_w_p, fc_b_p)
    return out_p[:B, :O]


def init_params(key, input_size, hidden_size, output_size):
    # PyTorch-style uniform(-1/sqrt(H), 1/sqrt(H)) init, deterministic from key.
    lim = 1.0 / float(hidden_size) ** 0.5
    ks = jax.random.split(key, 8)
    u = lambda k, shape: jax.random.uniform(k, shape, jnp.float32, -lim, lim)
    w_ih = u(ks[0], (4 * hidden_size, input_size))
    w_hh = u(ks[1], (4 * hidden_size, hidden_size))
    b_ih = u(ks[2], (4 * hidden_size,))
    b_hh = u(ks[3], (4 * hidden_size,))
    return dict(
        w_ih=w_ih,
        w_hh=w_hh,
        b=(b_ih + b_hh).reshape(1, 4 * hidden_size),
        attn_w=u(ks[4], (1, hidden_size)),
        attn_b=u(ks[5], (1, 1)),
        fc_w=u(ks[6], (output_size, hidden_size)),
        fc_b=u(ks[7], (1, output_size)),
    )


def _reference_forward(x, p):
    """Pure-JAX reference mirroring PyTorch semantics, for validation."""
    B, T, I = x.shape
    H = p["w_hh"].shape[1]

    def cell(carry, x_t):
        h, c = carry
        g = x_t @ p["w_ih"].T + h @ p["w_hh"].T + p["b"][0]
        i = jax.nn.sigmoid(g[:, 0:H])
        f = jax.nn.sigmoid(g[:, H:2 * H])
        gg = jnp.tanh(g[:, 2 * H:3 * H])
        o = jax.nn.sigmoid(g[:, 3 * H:4 * H])
        c = f * c + i * gg
        h = o * jnp.tanh(c)
        return (h, c), h

    (_, _), hs = jax.lax.scan(cell, (jnp.zeros((B, H)), jnp.zeros((B, H))),
                              jnp.transpose(x, (1, 0, 2)))
    lstm_out = jnp.transpose(hs, (1, 0, 2))                        # (B, T, H)
    scores = lstm_out @ p["attn_w"][0] + p["attn_b"][0, 0]         # (B, T)
    w = jax.nn.softmax(scores, axis=1)
    context = jnp.sum(w[:, :, None] * lstm_out, axis=1)            # (B, H)
    return context @ p["fc_w"].T + p["fc_b"]


if __name__ == "__main__":
    B, T, input_size, hidden_size, output_size = 2, 8, 4, 32, 3
    key = jax.random.PRNGKey(0)
    k_x, k_p = jax.random.split(key)
    x = jax.random.normal(k_x, (B, T, input_size), jnp.float32)
    params = init_params(k_p, input_size, hidden_size, output_size)

    ref = _reference_forward(x, params)

    # f32 matmul operands: bitwise-faithful path (v5e-friendly).
    out = jax.block_until_ready(lstm_attention_forward(x, params))
    assert out.shape == (B, output_size)
    assert jnp.allclose(out, ref, atol=1e-4, rtol=1e-4)

    # bf16 matmul operands (MXU-friendly on v6e/v7x); state & gate math stay f32.
    out_bf16 = jax.block_until_ready(
        lstm_attention_forward(x, params, matmul_dtype=jnp.bfloat16))
    assert out_bf16.shape == (B, output_size)
    assert jnp.allclose(out_bf16, ref, atol=1e-1, rtol=1e-1)

    print("KERNEL_OK")
</pallas_src>

<mosaic_0001>
module attributes {stable_mosaic.version = 11 : i64} {
  func.func @lstm_attn_kernel(%arg0: i32, %arg1: memref<8x8x128xf32, #tpu.memory_space<vmem>>, %arg2: memref<128x512xf32, #tpu.memory_space<vmem>>, %arg3: memref<128x512xf32, #tpu.memory_space<vmem>>, %arg4: memref<1x512xf32, #tpu.memory_space<vmem>>, %arg5: memref<1x128xf32, #tpu.memory_space<vmem>>, %arg6: memref<1xf32, #tpu.memory_space<smem>>, %arg7: memref<128x128xf32, #tpu.memory_space<vmem>>, %arg8: memref<1x128xf32, #tpu.memory_space<vmem>>, %arg9: memref<8x128xf32, #tpu.memory_space<vmem>>, %arg10: memref<64x512xf32, #tpu.memory_space<vmem>>) attributes {dimension_semantics = [#tpu.dimension_semantics<parallel>], iteration_bounds = array<i64: 1>, scalar_prefetch = 0 : i64, scratch_operands = 1 : i64, tpu.core_type = #tpu.core_type<tc>, window_params = [{transform_indices = @transform_0, window_bounds = array<i64: 8, 8, 128>}, {pipeline_mode = #tpu.pipeline_mode<synchronous>, transform_indices = @transform_1, window_bounds = array<i64: 128, 512>}, {pipeline_mode = #tpu.pipeline_mode<synchronous>, transform_indices = @transform_2, window_bounds = array<i64: 128, 512>}, {pipeline_mode = #tpu.pipeline_mode<synchronous>, transform_indices = @transform_3, window_bounds = array<i64: 1, 512>}, {pipeline_mode = #tpu.pipeline_mode<synchronous>, transform_indices = @transform_4, window_bounds = array<i64: 1, 128>}, {transform_indices = @transform_5, window_bounds = array<i64: 1>}, {pipeline_mode = #tpu.pipeline_mode<synchronous>, transform_indices = @transform_6, window_bounds = array<i64: 128, 128>}, {pipeline_mode = #tpu.pipeline_mode<synchronous>, transform_indices = @transform_7, window_bounds = array<i64: 1, 128>}, {transform_indices = @transform_8, window_bounds = array<i64: 8, 128>}]} {
    %c0 = arith.constant 0 : index
    %c0_0 = arith.constant 0 : index
    %0 = vector.load %arg4[%c0, %c0_0] : memref<1x512xf32, #tpu.memory_space<vmem>>, vector<1x512xf32>
    %c0_1 = arith.constant 0 : index
    %c0_2 = arith.constant 0 : index
    %1 = vector.load %arg5[%c0_1, %c0_2] : memref<1x128xf32, #tpu.memory_space<vmem>>, vector<1x128xf32>
    %c0_3 = arith.constant 0 : index
    %2 = memref.load %arg6[%c0_3] : memref<1xf32, #tpu.memory_space<smem>>
    %cst = arith.constant 0.000000e+00 : f32
    %3 = vector.broadcast %cst : f32 to vector<8x128xf32>
    %cst_4 = arith.constant 0.000000e+00 : f32
    %4 = vector.broadcast %cst_4 : f32 to vector<8x128xf32>
    %cst_5 = arith.constant 0xFF800000 : f32
    %5 = vector.broadcast %cst_5 : f32 to vector<8x1xf32>
    %cst_6 = arith.constant 0.000000e+00 : f32
    %6 = vector.broadcast %cst_6 : f32 to vector<8x1xf32>
    %cst_7 = arith.constant 0.000000e+00 : f32
    %7 = vector.broadcast %cst_7 : f32 to vector<8x128xf32>
    %c0_8 = arith.constant 0 : index
    %c0_9 = arith.constant 0 : index
    %c0_10 = arith.constant 0 : index
    %8 = vector.load %arg1[%c0_8, %c0_9, %c0_10] : memref<8x8x128xf32, #tpu.memory_space<vmem>>, vector<8x8x128xf32>
    %9 = vector.shape_cast %8 : vector<8x8x128xf32> to vector<64x128xf32>
    %c0_11 = arith.constant 0 : index
    %c0_12 = arith.constant 0 : index
    %10 = vector.load %arg2[%c0_11, %c0_12] : memref<128x512xf32, #tpu.memory_space<vmem>>, vector<128x512xf32>
    %cst_13 = arith.constant dense<0.000000e+00> : vector<64x512xf32>
    %11 = tpu.matmul %9, %10, %cst_13 {dimension_numbers = #tpu.dot_dimension_numbers<[1], [0], [0], [1], [0, 0, 1, 1], [], []>} : vector<64x128xf32>, vector<128x512xf32>, vector<64x512xf32> -> vector<64x512xf32>
    %12 = vector.broadcast %0 : vector<1x512xf32> to vector<64x512xf32>
    %13 = arith.addf %11, %12 : vector<64x512xf32>
    %c0_14 = arith.constant 0 : index
    %c0_15 = arith.constant 0 : index
    %14 = vector.load %arg10[%c0_14, %c0_15] : memref<64x512xf32, #tpu.memory_space<vmem>>, vector<64x512xf32>
    tpu.vector_store %arg10[%c0_14, %c0_15], %13 {strides = array<i32>} : memref<64x512xf32, #tpu.memory_space<vmem>>, vector<64x512xf32>,
    %c0_i32 = arith.constant 0 : i32
    %c8_i32 = arith.constant 8 : i32
    %15 = arith.muli %c0_i32, %c8_i32 : i32
    %16 = tpu.assume_multiple %15, 8 : i32
    %17 = arith.index_cast %16 : i32 to index
    %c0_16 = arith.constant 0 : index
    %18 = vector.load %arg10[%17, %c0_16] : memref<64x512xf32, #tpu.memory_space<vmem>>, vector<8x512xf32>
    %c0_17 = arith.constant 0 : index
    %c0_18 = arith.constant 0 : index
    %19 = vector.load %arg3[%c0_17, %c0_18] : memref<128x512xf32, #tpu.memory_space<vmem>>, vector<128x512xf32>
    %cst_19 = arith.constant dense<0.000000e+00> : vector<8x512xf32>
    %20 = tpu.matmul %3, %19, %cst_19 {dimension_numbers = #tpu.dot_dimension_numbers<[1], [0], [0], [1], [0, 0, 1, 1], [], []>} : vector<8x128xf32>, vector<128x512xf32>, vector<8x512xf32> -> vector<8x512xf32>
    %21 = arith.addf %18, %20 : vector<8x512xf32>
    %22 = vector.extract_strided_slice %21 {offsets = [0, 0], sizes = [8, 128], strides = [1, 1]} : vector<8x512xf32> to vector<8x128xf32>
    %23 = arith.negf %22 : vector<8x128xf32>
    %24 = math.exp %23 : vector<8x128xf32>
    %cst_20 = arith.constant 1.000000e+00 : f32
    %25 = vector.broadcast %cst_20 : f32 to vector<8x128xf32>
    %26 = arith.addf %25, %24 : vector<8x128xf32>
    %27 = arith.divf %25, %26 : vector<8x128xf32>
    %28 = vector.extract_strided_slice %21 {offsets = [0, 128], sizes = [8, 128], strides = [1, 1]} : vector<8x512xf32> to vector<8x128xf32>
    %29 = arith.negf %28 : vector<8x128xf32>
    %30 = math.exp %29 : vector<8x128xf32>
    %cst_21 = arith.constant 1.000000e+00 : f32
    %31 = vector.broadcast %cst_21 : f32 to vector<8x128xf32>
    %32 = arith.addf %31, %30 : vector<8x128xf32>
    %33 = arith.divf %31, %32 : vector<8x128xf32>
    %34 = vector.extract_strided_slice %21 {offsets = [0, 256], sizes = [8, 128], strides = [1, 1]} : vector<8x512xf32> to vector<8x128xf32>
    %35 = math.tanh %34 : vector<8x128xf32>
    %36 = vector.extract_strided_slice %21 {offsets = [0, 384], sizes = [8, 128], strides = [1, 1]} : vector<8x512xf32> to vector<8x128xf32>
    %37 = arith.negf %36 : vector<8x128xf32>
    %38 = math.exp %37 : vector<8x128xf32>
    %cst_22 = arith.constant 1.000000e+00 : f32
    %39 = vector.broadcast %cst_22 : f32 to vector<8x128xf32>
    %40 = arith.addf %39, %38 : vector<8x128xf32>
    %41 = arith.divf %39, %40 : vector<8x128xf32>
    %42 = arith.mulf %33, %4 : vector<8x128xf32>
    %43 = arith.mulf %27, %35 : vector<8x128xf32>
    %44 = arith.addf %42, %43 : vector<8x128xf32>
    %45 = math.tanh %44 : vector<8x128xf32>
    %46 = arith.mulf %41, %45 : vector<8x128xf32>
    %47 = vector.broadcast %1 : vector<1x128xf32> to vector<8x128xf32>
    %48 = arith.mulf %46, %47 : vector<8x128xf32>
    %cst_23 = arith.constant dense<0.000000e+00> : vector<8xf32>
    %49 = vector.multi_reduction <add>, %48, %cst_23 [1] : vector<8x128xf32> to vector<8xf32>
    %50 = vector.shape_cast %49 : vector<8xf32> to vector<8x1xf32>
    %51 = vector.broadcast %2 : f32 to vector<8x1xf32>
    %52 = arith.addf %50, %51 : vector<8x1xf32>
    %53 = arith.maximumf %5, %52 : vector<8x1xf32>
    %54 = arith.subf %5, %53 : vector<8x1xf32>
    %55 = math.exp %54 : vector<8x1xf32>
    %56 = arith.subf %52, %53 : vector<8x1xf32>
    %57 = math.exp %56 : vector<8x1xf32>
    %58 = arith.mulf %55, %6 : vector<8x1xf32>
    %59 = arith.addf %58, %57 : vector<8x1xf32>
    %60 = vector.broadcast %55 : vector<8x1xf32> to vector<8x128xf32>
    %61 = arith.mulf %60, %7 : vector<8x128xf32>
    %62 = vector.broadcast %57 : vector<8x1xf32> to vector<8x128xf32>
    %63 = arith.mulf %62, %46 : vector<8x128xf32>
    %64 = arith.addf %61, %63 : vector<8x128xf32>
    %c1_i32 = arith.constant 1 : i32
    %c8_i32_24 = arith.constant 8 : i32
    %65 = arith.muli %c1_i32, %c8_i32_24 : i32
    %66 = tpu.assume_multiple %65, 8 : i32
    %67 = arith.index_cast %66 : i32 to index
    %c0_25 = arith.constant 0 : index
    %68 = vector.load %arg10[%67, %c0_25] : memref<64x512xf32, #tpu.memory_space<vmem>>, vector<8x512xf32>
    %c0_26 = arith.constant 0 : index
    %c0_27 = arith.constant 0 : index
    %69 = vector.load %arg3[%c0_26, %c0_27] : memref<128x512xf32, #tpu.memory_space<vmem>>, vector<128x512xf32>
    %cst_28 = arith.constant dense<0.000000e+00> : vector<8x512xf32>
    %70 = tpu.matmul %46, %69, %cst_28 {dimension_numbers = #tpu.dot_dimension_numbers<[1], [0], [0], [1], [0, 0, 1, 1], [], []>} : vector<8x128xf32>, vector<128x512xf32>, vector<8x512xf32> -> vector<8x512xf32>
    %71 = arith.addf %68, %70 : vector<8x512xf32>
    %72 = vector.extract_strided_slice %71 {offsets = [0, 0], sizes = [8, 128], strides = [1, 1]} : vector<8x512xf32> to vector<8x128xf32>
    %73 = arith.negf %72 : vector<8x128xf32>
    %74 = math.exp %73 : vector<8x128xf32>
    %cst_29 = arith.constant 1.000000e+00 : f32
    %75 = vector.broadcast %cst_29 : f32 to vector<8x128xf32>
    %76 = arith.addf %75, %74 : vector<8x128xf32>
    %77 = arith.divf %75, %76 : vector<8x128xf32>
    %78 = vector.extract_strided_slice %71 {offsets = [0, 128], sizes = [8, 128], strides = [1, 1]} : vector<8x512xf32> to vector<8x128xf32>
    %79 = arith.negf %78 : vector<8x128xf32>
    %80 = math.exp %79 : vector<8x128xf32>
    %cst_30 = arith.constant 1.000000e+00 : f32
    %81 = vector.broadcast %cst_30 : f32 to vector<8x128xf32>
    %82 = arith.addf %81, %80 : vector<8x128xf32>
    %83 = arith.divf %81, %82 : vector<8x128xf32>
    %84 = vector.extract_strided_slice %71 {offsets = [0, 256], sizes = [8, 128], strides = [1, 1]} : vector<8x512xf32> to vector<8x128xf32>
    %85 = math.tanh %84 : vector<8x128xf32>
    %86 = vector.extract_strided_slice %71 {offsets = [0, 384], sizes = [8, 128], strides = [1, 1]} : vector<8x512xf32> to vector<8x128xf32>
    %87 = arith.negf %86 : vector<8x128xf32>
    %88 = math.exp %87 : vector<8x128xf32>
    %cst_31 = arith.constant 1.000000e+00 : f32
    %89 = vector.broadcast %cst_31 : f32 to vector<8x128xf32>
    %90 = arith.addf %89, %88 : vector<8x128xf32>
    %91 = arith.divf %89, %90 : vector<8x128xf32>
    %92 = arith.mulf %83, %44 : vector<8x128xf32>
    %93 = arith.mulf %77, %85 : vector<8x128xf32>
    %94 = arith.addf %92, %93 : vector<8x128xf32>
    %95 = math.tanh %94 : vector<8x128xf32>
    %96 = arith.mulf %91, %95 : vector<8x128xf32>
    %97 = vector.broadcast %1 : vector<1x128xf32> to vector<8x128xf32>
    %98 = arith.mulf %96, %97 : vector<8x128xf32>
    %cst_32 = arith.constant dense<0.000000e+00> : vector<8xf32>
    %99 = vector.multi_reduction <add>, %98, %cst_32 [1] : vector<8x128xf32> to vector<8xf32>
    %100 = vector.shape_cast %99 : vector<8xf32> to vector<8x1xf32>
    %101 = vector.broadcast %2 : f32 to vector<8x1xf32>
    %102 = arith.addf %100, %101 : vector<8x1xf32>
    %103 = arith.maximumf %53, %102 : vector<8x1xf32>
    %104 = arith.subf %53, %103 : vector<8x1xf32>
    %105 = math.exp %104 : vector<8x1xf32>
    %106 = arith.subf %102, %103 : vector<8x1xf32>
    %107 = math.exp %106 : vector<8x1xf32>
    %108 = arith.mulf %105, %59 : vector<8x1xf32>
    %109 = arith.addf %108, %107 : vector<8x1xf32>
    %110 = vector.broadcast %105 : vector<8x1xf32> to vector<8x128xf32>
    %111 = arith.mulf %110, %64 : vector<8x128xf32>
    %112 = vector.broadcast %107 : vector<8x1xf32> to vector<8x128xf32>
    %113 = arith.mulf %112, %96 : vector<8x128xf32>
    %114 = arith.addf %111, %113 : vector<8x128xf32>
    %c2_i32 = arith.constant 2 : i32
    %c8_i32_33 = arith.constant 8 : i32
    %115 = arith.muli %c2_i32, %c8_i32_33 : i32
    %116 = tpu.assume_multiple %115, 8 : i32
    %117 = arith.index_cast %116 : i32 to index
    %c0_34 = arith.constant 0 : index
    %118 = vector.load %arg10[%117, %c0_34] : memref<64x512xf32, #tpu.memory_space<vmem>>, vector<8x512xf32>
    %c0_35 = arith.constant 0 : index
    %c0_36 = arith.constant 0 : index
    %119 = vector.load %arg3[%c0_35, %c0_36] : memref<128x512xf32, #tpu.memory_space<vmem>>, vector<128x512xf32>
    %cst_37 = arith.constant dense<0.000000e+00> : vector<8x512xf32>
    %120 = tpu.matmul %96, %119, %cst_37 {dimension_numbers = #tpu.dot_dimension_numbers<[1], [0], [0], [1], [0, 0, 1, 1], [], []>} : vector<8x128xf32>, vector<128x512xf32>, vector<8x512xf32> -> vector<8x512xf32>
    %121 = arith.addf %118, %120 : vector<8x512xf32>
    %122 = vector.extract_strided_slice %121 {offsets = [0, 0], sizes = [8, 128], strides = [1, 1]} : vector<8x512xf32> to vector<8x128xf32>
    %123 = arith.negf %122 : vector<8x128xf32>
    %124 = math.exp %123 : vector<8x128xf32>
    %cst_38 = arith.constant 1.000000e+00 : f32
    %125 = vector.broadcast %cst_38 : f32 to vector<8x128xf32>
    %126 = arith.addf %125, %124 : vector<8x128xf32>
    %127 = arith.divf %125, %126 : vector<8x128xf32>
    %128 = vector.extract_strided_slice %121 {offsets = [0, 128], sizes = [8, 128], strides = [1, 1]} : vector<8x512xf32> to vector<8x128xf32>
    %129 = arith.negf %128 : vector<8x128xf32>
    %130 = math.exp %129 : vector<8x128xf32>
    %cst_39 = arith.constant 1.000000e+00 : f32
    %131 = vector.broadcast %cst_39 : f32 to vector<8x128xf32>
    %132 = arith.addf %131, %130 : vector<8x128xf32>
    %133 = arith.divf %131, %132 : vector<8x128xf32>
    %134 = vector.extract_strided_slice %121 {offsets = [0, 256], sizes = [8, 128], strides = [1, 1]} : vector<8x512xf32> to vector<8x128xf32>
    %135 = math.tanh %134 : vector<8x128xf32>
    %136 = vector.extract_strided_slice %121 {offsets = [0, 384], sizes = [8, 128], strides = [1, 1]} : vector<8x512xf32> to vector<8x128xf32>
    %137 = arith.negf %136 : vector<8x128xf32>
    %138 = math.exp %137 : vector<8x128xf32>
    %cst_40 = arith.constant 1.000000e+00 : f32
    %139 = vector.broadcast %cst_40 : f32 to vector<8x128xf32>
    %140 = arith.addf %139, %138 : vector<8x128xf32>
    %141 = arith.divf %139, %140 : vector<8x128xf32>
    %142 = arith.mulf %133, %94 : vector<8x128xf32>
    %143 = arith.mulf %127, %135 : vector<8x128xf32>
    %144 = arith.addf %142, %143 : vector<8x128xf32>
    %145 = math.tanh %144 : vector<8x128xf32>
    %146 = arith.mulf %141, %145 : vector<8x128xf32>
    %147 = vector.broadcast %1 : vector<1x128xf32> to vector<8x128xf32>
    %148 = arith.mulf %146, %147 : vector<8x128xf32>
    %cst_41 = arith.constant dense<0.000000e+00> : vector<8xf32>
    %149 = vector.multi_reduction <add>, %148, %cst_41 [1] : vector<8x128xf32> to vector<8xf32>
    %150 = vector.shape_cast %149 : vector<8xf32> to vector<8x1xf32>
    %151 = vector.broadcast %2 : f32 to vector<8x1xf32>
    %152 = arith.addf %150, %151 : vector<8x1xf32>
    %153 = arith.maximumf %103, %152 : vector<8x1xf32>
    %154 = arith.subf %103, %153 : vector<8x1xf32>
    %155 = math.exp %154 : vector<8x1xf32>
    %156 = arith.subf %152, %153 : vector<8x1xf32>
    %157 = math.exp %156 : vector<8x1xf32>
    %158 = arith.mulf %155, %109 : vector<8x1xf32>
    %159 = arith.addf %158, %157 : vector<8x1xf32>
    %160 = vector.broadcast %155 : vector<8x1xf32> to vector<8x128xf32>
    %161 = arith.mulf %160, %114 : vector<8x128xf32>
    %162 = vector.broadcast %157 : vector<8x1xf32> to vector<8x128xf32>
    %163 = arith.mulf %162, %146 : vector<8x128xf32>
    %164 = arith.addf %161, %163 : vector<8x128xf32>
    %c3_i32 = arith.constant 3 : i32
    %c8_i32_42 = arith.constant 8 : i32
    %165 = arith.muli %c3_i32, %c8_i32_42 : i32
    %166 = tpu.assume_multiple %165, 8 : i32
    %167 = arith.index_cast %166 : i32 to index
    %c0_43 = arith.constant 0 : index
    %168 = vector.load %arg10[%167, %c0_43] : memref<64x512xf32, #tpu.memory_space<vmem>>, vector<8x512xf32>
    %c0_44 = arith.constant 0 : index
    %c0_45 = arith.constant 0 : index
    %169 = vector.load %arg3[%c0_44, %c0_45] : memref<128x512xf32, #tpu.memory_space<vmem>>, vector<128x512xf32>
    %cst_46 = arith.constant dense<0.000000e+00> : vector<8x512xf32>
    %170 = tpu.matmul %146, %169, %cst_46 {dimension_numbers = #tpu.dot_dimension_numbers<[1], [0], [0], [1], [0, 0, 1, 1], [], []>} : vector<8x128xf32>, vector<128x512xf32>, vector<8x512xf32> -> vector<8x512xf32>
    %171 = arith.addf %168, %170 : vector<8x512xf32>
    %172 = vector.extract_strided_slice %171 {offsets = [0, 0], sizes = [8, 128], strides = [1, 1]} : vector<8x512xf32> to vector<8x128xf32>
    %173 = arith.negf %172 : vector<8x128xf32>
    %174 = math.exp %173 : vector<8x128xf32>
    %cst_47 = arith.constant 1.000000e+00 : f32
    %175 = vector.broadcast %cst_47 : f32 to vector<8x128xf32>
    %176 = arith.addf %175, %174 : vector<8x128xf32>
    %177 = arith.divf %175, %176 : vector<8x128xf32>
    %178 = vector.extract_strided_slice %171 {offsets = [0, 128], sizes = [8, 128], strides = [1, 1]} : vector<8x512xf32> to vector<8x128xf32>
    %179 = arith.negf %178 : vector<8x128xf32>
    %180 = math.exp %179 : vector<8x128xf32>
    %cst_48 = arith.constant 1.000000e+00 : f32
    %181 = vector.broadcast %cst_48 : f32 to vector<8x128xf32>
    %182 = arith.addf %181, %180 : vector<8x128xf32>
    %183 = arith.divf %181, %182 : vector<8x128xf32>
    %184 = vector.extract_strided_slice %171 {offsets = [0, 256], sizes = [8, 128], strides = [1, 1]} : vector<8x512xf32> to vector<8x128xf32>
    %185 = math.tanh %184 : vector<8x128xf32>
    %186 = vector.extract_strided_slice %171 {offsets = [0, 384], sizes = [8, 128], strides = [1, 1]} : vector<8x512xf32> to vector<8x128xf32>
    %187 = arith.negf %186 : vector<8x128xf32>
    %188 = math.exp %187 : vector<8x128xf32>
    %cst_49 = arith.constant 1.000000e+00 : f32
    %189 = vector.broadcast %cst_49 : f32 to vector<8x128xf32>
    %190 = arith.addf %189, %188 : vector<8x128xf32>
    %191 = arith.divf %189, %190 : vector<8x128xf32>
    %192 = arith.mulf %183, %144 : vector<8x128xf32>
    %193 = arith.mulf %177, %185 : vector<8x128xf32>
    %194 = arith.addf %192, %193 : vector<8x128xf32>
    %195 = math.tanh %194 : vector<8x128xf32>
    %196 = arith.mulf %191, %195 : vector<8x128xf32>
    %197 = vector.broadcast %1 : vector<1x128xf32> to vector<8x128xf32>
    %198 = arith.mulf %196, %197 : vector<8x128xf32>
    %cst_50 = arith.constant dense<0.000000e+00> : vector<8xf32>
    %199 = vector.multi_reduction <add>, %198, %cst_50 [1] : vector<8x128xf32> to vector<8xf32>
    %200 = vector.shape_cast %199 : vector<8xf32> to vector<8x1xf32>
    %201 = vector.broadcast %2 : f32 to vector<8x1xf32>
    %202 = arith.addf %200, %201 : vector<8x1xf32>
    %203 = arith.maximumf %153, %202 : vector<8x1xf32>
    %204 = arith.subf %153, %203 : vector<8x1xf32>
    %205 = math.exp %204 : vector<8x1xf32>
    %206 = arith.subf %202, %203 : vector<8x1xf32>
    %207 = math.exp %206 : vector<8x1xf32>
    %208 = arith.mulf %205, %159 : vector<8x1xf32>
    %209 = arith.addf %208, %207 : vector<8x1xf32>
    %210 = vector.broadcast %205 : vector<8x1xf32> to vector<8x128xf32>
    %211 = arith.mulf %210, %164 : vector<8x128xf32>
    %212 = vector.broadcast %207 : vector<8x1xf32> to vector<8x128xf32>
    %213 = arith.mulf %212, %196 : vector<8x128xf32>
    %214 = arith.addf %211, %213 : vector<8x128xf32>
    %c4_i32 = arith.constant 4 : i32
    %c8_i32_51 = arith.constant 8 : i32
    %215 = arith.muli %c4_i32, %c8_i32_51 : i32
    %216 = tpu.assume_multiple %215, 8 : i32
    %217 = arith.index_cast %216 : i32 to index
    %c0_52 = arith.constant 0 : index
    %218 = vector.load %arg10[%217, %c0_52] : memref<64x512xf32, #tpu.memory_space<vmem>>, vector<8x512xf32>
    %c0_53 = arith.constant 0 : index
    %c0_54 = arith.constant 0 : index
    %219 = vector.load %arg3[%c0_53, %c0_54] : memref<128x512xf32, #tpu.memory_space<vmem>>, vector<128x512xf32>
    %cst_55 = arith.constant dense<0.000000e+00> : vector<8x512xf32>
    %220 = tpu.matmul %196, %219, %cst_55 {dimension_numbers = #tpu.dot_dimension_numbers<[1], [0], [0], [1], [0, 0, 1, 1], [], []>} : vector<8x128xf32>, vector<128x512xf32>, vector<8x512xf32> -> vector<8x512xf32>
    %221 = arith.addf %218, %220 : vector<8x512xf32>
    %222 = vector.extract_strided_slice %221 {offsets = [0, 0], sizes = [8, 128], strides = [1, 1]} : vector<8x512xf32> to vector<8x128xf32>
    %223 = arith.negf %222 : vector<8x128xf32>
    %224 = math.exp %223 : vector<8x128xf32>
    %cst_56 = arith.constant 1.000000e+00 : f32
    %225 = vector.broadcast %cst_56 : f32 to vector<8x128xf32>
    %226 = arith.addf %225, %224 : vector<8x128xf32>
    %227 = arith.divf %225, %226 : vector<8x128xf32>
    %228 = vector.extract_strided_slice %221 {offsets = [0, 128], sizes = [8, 128], strides = [1, 1]} : vector<8x512xf32> to vector<8x128xf32>
    %229 = arith.negf %228 : vector<8x128xf32>
    %230 = math.exp %229 : vector<8x128xf32>
    %cst_57 = arith.constant 1.000000e+00 : f32
    %231 = vector.broadcast %cst_57 : f32 to vector<8x128xf32>
    %232 = arith.addf %231, %230 : vector<8x128xf32>
    %233 = arith.divf %231, %232 : vector<8x128xf32>
    %234 = vector.extract_strided_slice %221 {offsets = [0, 256], sizes = [8, 128], strides = [1, 1]} : vector<8x512xf32> to vector<8x128xf32>
    %235 = math.tanh %234 : vector<8x128xf32>
    %236 = vector.extract_strided_slice %221 {offsets = [0, 384], sizes = [8, 128], strides = [1, 1]} : vector<8x512xf32> to vector<8x128xf32>
    %237 = arith.negf %236 : vector<8x128xf32>
    %238 = math.exp %237 : vector<8x128xf32>
    %cst_58 = arith.constant 1.000000e+00 : f32
    %239 = vector.broadcast %cst_58 : f32 to vector<8x128xf32>
    %240 = arith.addf %239, %238 : vector<8x128xf32>
    %241 = arith.divf %239, %240 : vector<8x128xf32>
    %242 = arith.mulf %233, %194 : vector<8x128xf32>
    %243 = arith.mulf %227, %235 : vector<8x128xf32>
    %244 = arith.addf %242, %243 : vector<8x128xf32>
    %245 = math.tanh %244 : vector<8x128xf32>
    %246 = arith.mulf %241, %245 : vector<8x128xf32>
    %247 = vector.broadcast %1 : vector<1x128xf32> to vector<8x128xf32>
    %248 = arith.mulf %246, %247 : vector<8x128xf32>
    %cst_59 = arith.constant dense<0.000000e+00> : vector<8xf32>
    %249 = vector.multi_reduction <add>, %248, %cst_59 [1] : vector<8x128xf32> to vector<8xf32>
    %250 = vector.shape_cast %249 : vector<8xf32> to vector<8x1xf32>
    %251 = vector.broadcast %2 : f32 to vector<8x1xf32>
    %252 = arith.addf %250, %251 : vector<8x1xf32>
    %253 = arith.maximumf %203, %252 : vector<8x1xf32>
    %254 = arith.subf %203, %253 : vector<8x1xf32>
    %255 = math.exp %254 : vector<8x1xf32>
    %256 = arith.subf %252, %253 : vector<8x1xf32>
    %257 = math.exp %256 : vector<8x1xf32>
    %258 = arith.mulf %255, %209 : vector<8x1xf32>
    %259 = arith.addf %258, %257 : vector<8x1xf32>
    %260 = vector.broadcast %255 : vector<8x1xf32> to vector<8x128xf32>
    %261 = arith.mulf %260, %214 : vector<8x128xf32>
    %262 = vector.broadcast %257 : vector<8x1xf32> to vector<8x128xf32>
    %263 = arith.mulf %262, %246 : vector<8x128xf32>
    %264 = arith.addf %261, %263 : vector<8x128xf32>
    %c5_i32 = arith.constant 5 : i32
    %c8_i32_60 = arith.constant 8 : i32
    %265 = arith.muli %c5_i32, %c8_i32_60 : i32
    %266 = tpu.assume_multiple %265, 8 : i32
    %267 = arith.index_cast %266 : i32 to index
    %c0_61 = arith.constant 0 : index
    %268 = vector.load %arg10[%267, %c0_61] : memref<64x512xf32, #tpu.memory_space<vmem>>, vector<8x512xf32>
    %c0_62 = arith.constant 0 : index
    %c0_63 = arith.constant 0 : index
    %269 = vector.load %arg3[%c0_62, %c0_63] : memref<128x512xf32, #tpu.memory_space<vmem>>, vector<128x512xf32>
    %cst_64 = arith.constant dense<0.000000e+00> : vector<8x512xf32>
    %270 = tpu.matmul %246, %269, %cst_64 {dimension_numbers = #tpu.dot_dimension_numbers<[1], [0], [0], [1], [0, 0, 1, 1], [], []>} : vector<8x128xf32>, vector<128x512xf32>, vector<8x512xf32> -> vector<8x512xf32>
    %271 = arith.addf %268, %270 : vector<8x512xf32>
    %272 = vector.extract_strided_slice %271 {offsets = [0, 0], sizes = [8, 128], strides = [1, 1]} : vector<8x512xf32> to vector<8x128xf32>
    %273 = arith.negf %272 : vector<8x128xf32>
    %274 = math.exp %273 : vector<8x128xf32>
    %cst_65 = arith.constant 1.000000e+00 : f32
    %275 = vector.broadcast %cst_65 : f32 to vector<8x128xf32>
    %276 = arith.addf %275, %274 : vector<8x128xf32>
    %277 = arith.divf %275, %276 : vector<8x128xf32>
    %278 = vector.extract_strided_slice %271 {offsets = [0, 128], sizes = [8, 128], strides = [1, 1]} : vector<8x512xf32> to vector<8x128xf32>
    %279 = arith.negf %278 : vector<8x128xf32>
    %280 = math.exp %279 : vector<8x128xf32>
    %cst_66 = arith.constant 1.000000e+00 : f32
    %281 = vector.broadcast %cst_66 : f32 to vector<8x128xf32>
    %282 = arith.addf %281, %280 : vector<8x128xf32>
    %283 = arith.divf %281, %282 : vector<8x128xf32>
    %284 = vector.extract_strided_slice %271 {offsets = [0, 256], sizes = [8, 128], strides = [1, 1]} : vector<8x512xf32> to vector<8x128xf32>
    %285 = math.tanh %284 : vector<8x128xf32>
    %286 = vector.extract_strided_slice %271 {offsets = [0, 384], sizes = [8, 128], strides = [1, 1]} : vector<8x512xf32> to vector<8x128xf32>
    %287 = arith.negf %286 : vector<8x128xf32>
    %288 = math.exp %287 : vector<8x128xf32>
    %cst_67 = arith.constant 1.000000e+00 : f32
    %289 = vector.broadcast %cst_67 : f32 to vector<8x128xf32>
    %290 = arith.addf %289, %288 : vector<8x128xf32>
    %291 = arith.divf %289, %290 : vector<8x128xf32>
    %292 = arith.mulf %283, %244 : vector<8x128xf32>
    %293 = arith.mulf %277, %285 : vector<8x128xf32>
    %294 = arith.addf %292, %293 : vector<8x128xf32>
    %295 = math.tanh %294 : vector<8x128xf32>
    %296 = arith.mulf %291, %295 : vector<8x128xf32>
    %297 = vector.broadcast %1 : vector<1x128xf32> to vector<8x128xf32>
    %298 = arith.mulf %296, %297 : vector<8x128xf32>
    %cst_68 = arith.constant dense<0.000000e+00> : vector<8xf32>
    %299 = vector.multi_reduction <add>, %298, %cst_68 [1] : vector<8x128xf32> to vector<8xf32>
    %300 = vector.shape_cast %299 : vector<8xf32> to vector<8x1xf32>
    %301 = vector.broadcast %2 : f32 to vector<8x1xf32>
    %302 = arith.addf %300, %301 : vector<8x1xf32>
    %303 = arith.maximumf %253, %302 : vector<8x1xf32>
    %304 = arith.subf %253, %303 : vector<8x1xf32>
    %305 = math.exp %304 : vector<8x1xf32>
    %306 = arith.subf %302, %303 : vector<8x1xf32>
    %307 = math.exp %306 : vector<8x1xf32>
    %308 = arith.mulf %305, %259 : vector<8x1xf32>
    %309 = arith.addf %308, %307 : vector<8x1xf32>
    %310 = vector.broadcast %305 : vector<8x1xf32> to vector<8x128xf32>
    %311 = arith.mulf %310, %264 : vector<8x128xf32>
    %312 = vector.broadcast %307 : vector<8x1xf32> to vector<8x128xf32>
    %313 = arith.mulf %312, %296 : vector<8x128xf32>
    %314 = arith.addf %311, %313 : vector<8x128xf32>
    %c6_i32 = arith.constant 6 : i32
    %c8_i32_69 = arith.constant 8 : i32
    %315 = arith.muli %c6_i32, %c8_i32_69 : i32
    %316 = tpu.assume_multiple %315, 8 : i32
    %317 = arith.index_cast %316 : i32 to index
    %c0_70 = arith.constant 0 : index
    %318 = vector.load %arg10[%317, %c0_70] : memref<64x512xf32, #tpu.memory_space<vmem>>, vector<8x512xf32>
    %c0_71 = arith.constant 0 : index
    %c0_72 = arith.constant 0 : index
    %319 = vector.load %arg3[%c0_71, %c0_72] : memref<128x512xf32, #tpu.memory_space<vmem>>, vector<128x512xf32>
    %cst_73 = arith.constant dense<0.000000e+00> : vector<8x512xf32>
    %320 = tpu.matmul %296, %319, %cst_73 {dimension_numbers = #tpu.dot_dimension_numbers<[1], [0], [0], [1], [0, 0, 1, 1], [], []>} : vector<8x128xf32>, vector<128x512xf32>, vector<8x512xf32> -> vector<8x512xf32>
    %321 = arith.addf %318, %320 : vector<8x512xf32>
    %322 = vector.extract_strided_slice %321 {offsets = [0, 0], sizes = [8, 128], strides = [1, 1]} : vector<8x512xf32> to vector<8x128xf32>
    %323 = arith.negf %322 : vector<8x128xf32>
    %324 = math.exp %323 : vector<8x128xf32>
    %cst_74 = arith.constant 1.000000e+00 : f32
    %325 = vector.broadcast %cst_74 : f32 to vector<8x128xf32>
    %326 = arith.addf %325, %324 : vector<8x128xf32>
    %327 = arith.divf %325, %326 : vector<8x128xf32>
    %328 = vector.extract_strided_slice %321 {offsets = [0, 128], sizes = [8, 128], strides = [1, 1]} : vector<8x512xf32> to vector<8x128xf32>
    %329 = arith.negf %328 : vector<8x128xf32>
    %330 = math.exp %329 : vector<8x128xf32>
    %cst_75 = arith.constant 1.000000e+00 : f32
    %331 = vector.broadcast %cst_75 : f32 to vector<8x128xf32>
    %332 = arith.addf %331, %330 : vector<8x128xf32>
    %333 = arith.divf %331, %332 : vector<8x128xf32>
    %334 = vector.extract_strided_slice %321 {offsets = [0, 256], sizes = [8, 128], strides = [1, 1]} : vector<8x512xf32> to vector<8x128xf32>
    %335 = math.tanh %334 : vector<8x128xf32>
    %336 = vector.extract_strided_slice %321 {offsets = [0, 384], sizes = [8, 128], strides = [1, 1]} : vector<8x512xf32> to vector<8x128xf32>
    %337 = arith.negf %336 : vector<8x128xf32>
    %338 = math.exp %337 : vector<8x128xf32>
    %cst_76 = arith.constant 1.000000e+00 : f32
    %339 = vector.broadcast %cst_76 : f32 to vector<8x128xf32>
    %340 = arith.addf %339, %338 : vector<8x128xf32>
    %341 = arith.divf %339, %340 : vector<8x128xf32>
    %342 = arith.mulf %333, %294 : vector<8x128xf32>
    %343 = arith.mulf %327, %335 : vector<8x128xf32>
    %344 = arith.addf %342, %343 : vector<8x128xf32>
    %345 = math.tanh %344 : vector<8x128xf32>
    %346 = arith.mulf %341, %345 : vector<8x128xf32>
    %347 = vector.broadcast %1 : vector<1x128xf32> to vector<8x128xf32>
    %348 = arith.mulf %346, %347 : vector<8x128xf32>
    %cst_77 = arith.constant dense<0.000000e+00> : vector<8xf32>
    %349 = vector.multi_reduction <add>, %348, %cst_77 [1] : vector<8x128xf32> to vector<8xf32>
    %350 = vector.shape_cast %349 : vector<8xf32> to vector<8x1xf32>
    %351 = vector.broadcast %2 : f32 to vector<8x1xf32>
    %352 = arith.addf %350, %351 : vector<8x1xf32>
    %353 = arith.maximumf %303, %352 : vector<8x1xf32>
    %354 = arith.subf %303, %353 : vector<8x1xf32>
    %355 = math.exp %354 : vector<8x1xf32>
    %356 = arith.subf %352, %353 : vector<8x1xf32>
    %357 = math.exp %356 : vector<8x1xf32>
    %358 = arith.mulf %355, %309 : vector<8x1xf32>
    %359 = arith.addf %358, %357 : vector<8x1xf32>
    %360 = vector.broadcast %355 : vector<8x1xf32> to vector<8x128xf32>
    %361 = arith.mulf %360, %314 : vector<8x128xf32>
    %362 = vector.broadcast %357 : vector<8x1xf32> to vector<8x128xf32>
    %363 = arith.mulf %362, %346 : vector<8x128xf32>
    %364 = arith.addf %361, %363 : vector<8x128xf32>
    %c7_i32 = arith.constant 7 : i32
    %c8_i32_78 = arith.constant 8 : i32
    %365 = arith.muli %c7_i32, %c8_i32_78 : i32
    %366 = tpu.assume_multiple %365, 8 : i32
    %367 = arith.index_cast %366 : i32 to index
    %c0_79 = arith.constant 0 : index
    %368 = vector.load %arg10[%367, %c0_79] : memref<64x512xf32, #tpu.memory_space<vmem>>, vector<8x512xf32>
    %c0_80 = arith.constant 0 : index
    %c0_81 = arith.constant 0 : index
    %369 = vector.load %arg3[%c0_80, %c0_81] : memref<128x512xf32, #tpu.memory_space<vmem>>, vector<128x512xf32>
    %cst_82 = arith.constant dense<0.000000e+00> : vector<8x512xf32>
    %370 = tpu.matmul %346, %369, %cst_82 {dimension_numbers = #tpu.dot_dimension_numbers<[1], [0], [0], [1], [0, 0, 1, 1], [], []>} : vector<8x128xf32>, vector<128x512xf32>, vector<8x512xf32> -> vector<8x512xf32>
    %371 = arith.addf %368, %370 : vector<8x512xf32>
    %372 = vector.extract_strided_slice %371 {offsets = [0, 0], sizes = [8, 128], strides = [1, 1]} : vector<8x512xf32> to vector<8x128xf32>
    %373 = arith.negf %372 : vector<8x128xf32>
    %374 = math.exp %373 : vector<8x128xf32>
    %cst_83 = arith.constant 1.000000e+00 : f32
    %375 = vector.broadcast %cst_83 : f32 to vector<8x128xf32>
    %376 = arith.addf %375, %374 : vector<8x128xf32>
    %377 = arith.divf %375, %376 : vector<8x128xf32>
    %378 = vector.extract_strided_slice %371 {offsets = [0, 128], sizes = [8, 128], strides = [1, 1]} : vector<8x512xf32> to vector<8x128xf32>
    %379 = arith.negf %378 : vector<8x128xf32>
    %380 = math.exp %379 : vector<8x128xf32>
    %cst_84 = arith.constant 1.000000e+00 : f32
    %381 = vector.broadcast %cst_84 : f32 to vector<8x128xf32>
    %382 = arith.addf %381, %380 : vector<8x128xf32>
    %383 = arith.divf %381, %382 : vector<8x128xf32>
    %384 = vector.extract_strided_slice %371 {offsets = [0, 256], sizes = [8, 128], strides = [1, 1]} : vector<8x512xf32> to vector<8x128xf32>
    %385 = math.tanh %384 : vector<8x128xf32>
    %386 = vector.extract_strided_slice %371 {offsets = [0, 384], sizes = [8, 128], strides = [1, 1]} : vector<8x512xf32> to vector<8x128xf32>
    %387 = arith.negf %386 : vector<8x128xf32>
    %388 = math.exp %387 : vector<8x128xf32>
    %cst_85 = arith.constant 1.000000e+00 : f32
    %389 = vector.broadcast %cst_85 : f32 to vector<8x128xf32>
    %390 = arith.addf %389, %388 : vector<8x128xf32>
    %391 = arith.divf %389, %390 : vector<8x128xf32>
    %392 = arith.mulf %383, %344 : vector<8x128xf32>
    %393 = arith.mulf %377, %385 : vector<8x128xf32>
    %394 = arith.addf %392, %393 : vector<8x128xf32>
    %395 = math.tanh %394 : vector<8x128xf32>
    %396 = arith.mulf %391, %395 : vector<8x128xf32>
    %397 = vector.broadcast %1 : vector<1x128xf32> to vector<8x128xf32>
    %398 = arith.mulf %396, %397 : vector<8x128xf32>
    %cst_86 = arith.constant dense<0.000000e+00> : vector<8xf32>
    %399 = vector.multi_reduction <add>, %398, %cst_86 [1] : vector<8x128xf32> to vector<8xf32>
    %400 = vector.shape_cast %399 : vector<8xf32> to vector<8x1xf32>
    %401 = vector.broadcast %2 : f32 to vector<8x1xf32>
    %402 = arith.addf %400, %401 : vector<8x1xf32>
    %403 = arith.maximumf %353, %402 : vector<8x1xf32>
    %404 = arith.subf %353, %403 : vector<8x1xf32>
    %405 = math.exp %404 : vector<8x1xf32>
    %406 = arith.subf %402, %403 : vector<8x1xf32>
    %407 = math.exp %406 : vector<8x1xf32>
    %408 = arith.mulf %405, %359 : vector<8x1xf32>
    %409 = arith.addf %408, %407 : vector<8x1xf32>
    %410 = vector.broadcast %405 : vector<8x1xf32> to vector<8x128xf32>
    %411 = arith.mulf %410, %364 : vector<8x128xf32>
    %412 = vector.broadcast %407 : vector<8x1xf32> to vector<8x128xf32>
    %413 = arith.mulf %412, %396 : vector<8x128xf32>
    %414 = arith.addf %411, %413 : vector<8x128xf32>
    %c8_i32_87 = arith.constant 8 : i32
    %415 = vector.broadcast %409 : vector<8x1xf32> to vector<8x128xf32>
    %416 = arith.divf %414, %415 : vector<8x128xf32>
    %c0_88 = arith.constant 0 : index
    %c0_89 = arith.constant 0 : index
    %417 = vector.load %arg7[%c0_88, %c0_89] : memref<128x128xf32, #tpu.memory_space<vmem>>, vector<128x128xf32>
    %cst_90 = arith.constant dense<0.000000e+00> : vector<8x128xf32>
    %418 = tpu.matmul %416, %417, %cst_90 {dimension_numbers = #tpu.dot_dimension_numbers<[1], [0], [0], [1], [0, 0, 1, 1], [], []>} : vector<8x128xf32>, vector<128x128xf32>, vector<8x128xf32> -> vector<8x128xf32>
    %c0_91 = arith.constant 0 : index
    %c0_92 = arith.constant 0 : index
    %419 = vector.load %arg8[%c0_91, %c0_92] : memref<1x128xf32, #tpu.memory_space<vmem>>, vector<1x128xf32>
    %420 = vector.broadcast %419 : vector<1x128xf32> to vector<8x128xf32>
    %421 = arith.addf %418, %420 : vector<8x128xf32>
    %c0_93 = arith.constant 0 : index
    %c0_94 = arith.constant 0 : index
    %422 = vector.load %arg9[%c0_93, %c0_94] : memref<8x128xf32, #tpu.memory_space<vmem>>, vector<8x128xf32>
    tpu.vector_store %arg9[%c0_93, %c0_94], %421 {strides = array<i32>} : memref<8x128xf32, #tpu.memory_space<vmem>>, vector<8x128xf32>,
    return
  }
  func.func @transform_0(%arg0: i32) -> (i32, i32, i32) {
    %c0_i32 = arith.constant 0 : i32
    %c0_i32_0 = arith.constant 0 : i32
    %c0_i32_1 = arith.constant 0 : i32
    return %c0_i32, %arg0, %c0_i32_0 : i32, i32, i32
  }
  func.func @transform_1(%arg0: i32) -> (i32, i32) {
    %c0_i32 = arith.constant 0 : i32
    %c0_i32_0 = arith.constant 0 : i32
    %c0_i32_1 = arith.constant 0 : i32
    return %c0_i32, %c0_i32_0 : i32, i32
  }
  func.func @transform_2(%arg0: i32) -> (i32, i32) {
    %c0_i32 = arith.constant 0 : i32
    %c0_i32_0 = arith.constant 0 : i32
    %c0_i32_1 = arith.constant 0 : i32
    return %c0_i32, %c0_i32_0 : i32, i32
  }
  func.func @transform_3(%arg0: i32) -> (i32, i32) {
    %c0_i32 = arith.constant 0 : i32
    %c0_i32_0 = arith.constant 0 : i32
    %c0_i32_1 = arith.constant 0 : i32
    return %c0_i32, %c0_i32_0 : i32, i32
  }
  func.func @transform_4(%arg0: i32) -> (i32, i32) {
    %c0_i32 = arith.constant 0 : i32
    %c0_i32_0 = arith.constant 0 : i32
    %c0_i32_1 = arith.constant 0 : i32
    return %c0_i32, %c0_i32_0 : i32, i32
  }
  func.func @transform_5(%arg0: i32) -> i32 {
    %c0_i32 = arith.constant 0 : i32
    %c0_i32_0 = arith.constant 0 : i32
    return %c0_i32 : i32
  }
  func.func @transform_6(%arg0: i32) -> (i32, i32) {
    %c0_i32 = arith.constant 0 : i32
    %c0_i32_0 = arith.constant 0 : i32
    %c0_i32_1 = arith.constant 0 : i32
    return %c0_i32, %c0_i32_0 : i32, i32
  }
  func.func @transform_7(%arg0: i32) -> (i32, i32) {
    %c0_i32 = arith.constant 0 : i32
    %c0_i32_0 = arith.constant 0 : i32
    %c0_i32_1 = arith.constant 0 : i32
    return %c0_i32, %c0_i32_0 : i32, i32
  }
  func.func @transform_8(%arg0: i32) -> (i32, i32) {
    %c0_i32 = arith.constant 0 : i32
    %c0_i32_0 = arith.constant 0 : i32
    return %arg0, %c0_i32 : i32, i32
  }
}

</mosaic_0001>

<bundles_post_ra>
// kernel: tpu_custom_call.1
= control target key start
LH: loop header
LB: loop body
LE: loop exit
PB: predicated region body
PF: predicated region fallthrough
CT: control target
= control target key end

     0   :  { %14 = vsyncpa [#allocation5], 0  ;;  %s3840_s0 = inlined_call_operand.hbm [shape: f32[8,8,128], index: 0, kind: input, shape index: {}]   ;;  %s3841_s1 = inlined_call_operand.hbm [shape: f32[128,512], index: 1, kind: input, shape index: {}]   ;;  %s3842_s2 = inlined_call_operand.hbm [shape: f32[128,512], index: 2, kind: input, shape index: {}]   ;;  %s3843_s3 = inlined_call_operand.vmem [shape: f32[1,512], index: 3, kind: input, shape index: {}]   ;;  %s3844_s4 = inlined_call_operand.vmem [shape: f32[1,128], index: 4, kind: input, shape index: {}]   ;;  %s3845_s5 = inlined_call_operand.<no memory space> [shape: f32[1], index: 5, kind: input, shape index: {}]   ;;  %s3846_s6 = inlined_call_operand.hbm [shape: f32[128,128], index: 6, kind: input, shape index: {}]   ;;  %s3847_s7 = inlined_call_operand.vmem [shape: f32[1,128], index: 7, kind: input, shape index: {}]   ;;  %s3848_s8 = inlined_call_operand.hbm [shape: f32[8,128], index: 8, kind: output, shape index: {}]  }
   0x1   :  { %15 = vsyncpa [#allocation8], 0 }
   0x2   :  { %16 = vsyncpa [#allocation11], 0 }
   0x3   :  { %17 = vsyncpa [#allocation6], 0  ;;  %s3207_s27 = smov [#allocation7]   ;;  %s3089_s9 = scalar_lea.hbm %s3841_s1, 8192 }
   0x4   :  { %s35_s28 = sshll.u32 %s3207_s27, 4  ;;  %p3090_p0 = scmp.ne.s32.totalorder %s3841_s1, %s3089_s9  ;;  %s36_s28 = int_to_ptr.vmem [resolvable:$true] %s35_s28 }
   0x5   :  { %p3093_p1 = scmp.lt.u32.totalorder %s3089_s9, %s3841_s1 }
   0x7   :  { %p3095_p2 = pnand %p3093_p1, %p3090_p0 }
   0x9   :  { %3098 = shalt.err (!%p3095_p2)
}
   0xa   :  { %s3099_s14 = scalar_lea.vmem %s36_s28, 8192  ;;  %p3104_p4 = scmp.lt.s32.totalorder %s36_s28, %s36_s28 }
   0xb   :  { %p3100_p3 = scmp.ne.s32.totalorder %s36_s28, %s3099_s14  ;;  %p3105_p5 = scmp.lt.s32.totalorder %s3099_s14, %s3099_s14 }
   0xd   :  { %p3106_p6 = por %p3105_p5, %p3104_p4 }
   0xf   :  { %p3107_p7 = pnand %p3106_p6, %p3100_p3 }
  0x11   :  { %3110 = shalt.err (!%p3107_p7)
}
  0x12   :  { %s3208_s15 = smov 512   ;;  %s3209_s16 = smov 32  }
  0x13   :  { %41 = dma.hbm_to_vmem [thread:$0]  %s3841_s1, 8192, %s36_s28, [#allocation8], %s3208_s15, %s3208_s15, %s3209_s16  }
  0x14   :  { %s3210_s19 = smov [#allocation4]   ;;  %s3111_s23 = scalar_lea.hbm %s3840_s0, 1024 }
  0x15   :  { %s23_s20 = sshll.u32 %s3210_s19, 4  ;;  %p3112_p8 = scmp.ne.s32.totalorder %s3840_s0, %s3111_s23  ;;  %s24_s20 = int_to_ptr.vmem [resolvable:$true] %s23_s20 }
  0x16   :  { %p3115_p9 = scmp.lt.u32.totalorder %s3111_s23, %s3840_s0 }
  0x18   :  { %p3117_p10 = pnand %p3115_p9, %p3112_p8 }
  0x1a   :  { %3120 = shalt.err (!%p3117_p10)
}
  0x1b   :  { %s3121_s29 = scalar_lea.vmem %s24_s20, 1024  ;;  %p3126_p12 = scmp.lt.s32.totalorder %s24_s20, %s24_s20 }
  0x1c   :  { %p3122_p11 = scmp.ne.s32.totalorder %s24_s20, %s3121_s29  ;;  %p3127_p13 = scmp.lt.s32.totalorder %s3121_s29, %s3121_s29 }
  0x1e   :  { %p3128_p0 = por %p3127_p13, %p3126_p12 }
  0x20   :  { %p3129_p1 = pnand %p3128_p0, %p3122_p11 }
  0x22   :  { %3132 = shalt.err (!%p3129_p1)
}
  0x23   :  { %s3211_s1 = smov 128   ;;  %s3212_s28 = smov 8  }
  0x24   :  { %29 = dma.hbm_to_vmem [thread:$0]  %s3840_s0, 1024, %s24_s20, [#allocation5], %s3211_s1, %s3211_s1, %s3212_s28  }
  0x25   :  { %s3213_s10 = smov [#allocation9]   ;;  %s3214_s12 = smov [#allocation10]  }
  0x26   :  { %s47_s11 = sshll.u32 %s3213_s10, 4  ;;  %s65_s13 = sshll.u32 %s3214_s12, 4  ;;  %s48_s11 = int_to_ptr.vmem [resolvable:$true] %s47_s11  ;;  %s3294_s13 = int_to_ptr.vmem [resolvable:$true] %s65_s13 }
  0x27   :  { %s3133_s18 = scalar_lea.hbm %s3842_s2, 8192 }
  0x28   :  { %p3134_p2 = scmp.ne.s32.totalorder %s3842_s2, %s3133_s18  ;;  %p3137_p3 = scmp.lt.u32.totalorder %s3133_s18, %s3842_s2 }
  0x2a   :  { %p3139_p4 = pnand %p3137_p3, %p3134_p2 }
  0x2c   :  { %3142 = shalt.err (!%p3139_p4)
}
  0x2d   :  { %s3143_s0 = scalar_lea.vmem %s48_s11, 8192  ;;  %p3148_p6 = scmp.lt.s32.totalorder %s48_s11, %s48_s11 }
  0x2e   :  { %p3144_p5 = scmp.ne.s32.totalorder %s48_s11, %s3143_s0  ;;  %p3149_p7 = scmp.lt.s32.totalorder %s3143_s0, %s3143_s0 }
  0x30   :  { %p3150_p8 = por %p3149_p7, %p3148_p6 }
  0x32   :  { %p3151_p9 = pnand %p3150_p8, %p3144_p5 }
  0x34   :  { %3154 = shalt.err (!%p3151_p9)
}
  0x35   :  { %53 = dma.hbm_to_vmem [thread:$0]  %s3842_s2, 8192, %s48_s11, [#allocation8], %s3208_s15, %s3208_s15, %s3209_s16  }
  0x36   :  { %s3155_s27 = scalar_lea.hbm %s3846_s6, 2048 }
  0x37   :  { %p3156_p10 = scmp.ne.s32.totalorder %s3846_s6, %s3155_s27  ;;  %p3159_p11 = scmp.lt.u32.totalorder %s3155_s27, %s3846_s6 }
  0x39   :  { %p3161_p12 = pnand %p3159_p11, %p3156_p10 }
  0x3b   :  { %3164 = shalt.err (!%p3161_p12)
}
  0x3c   :  { %s3165_s12 = scalar_lea.vmem %s3294_s13, 2048  ;;  %p3170_p0 = scmp.lt.s32.totalorder %s3294_s13, %s3294_s13 }
  0x3d   :  { %p3166_p13 = scmp.ne.s32.totalorder %s3294_s13, %s3165_s12  ;;  %p3171_p1 = scmp.lt.s32.totalorder %s3165_s12, %s3165_s12 }
  0x3f   :  { %p3172_p2 = por %p3171_p1, %p3170_p0 }
  0x41   :  { %p3173_p3 = pnand %p3172_p2, %p3166_p13 }
  0x43   :  { %3176 = shalt.err (!%p3173_p3)
}
  0x44   :  { %71 = dma.hbm_to_vmem [thread:$0]  %s3846_s6, 2048, %s3294_s13, [#allocation11], %s3211_s1, %s3211_s1, %s3212_s28  }
  0x45   :  { %3199 = dma.done.wait [#allocation5], 1024  }
  0x46   :  { %3200 = vsyncadd [#allocation5], 4294966272 }
  0x47   :  { %3201 = dma.done.wait [#allocation8], 16384  }
  0x48   :  { %3202 = vsyncadd [#allocation8], 4294950912 }
  0x49   :  { %3203 = dma.done.wait [#allocation11], 2048  }
  0x4a   :  { %3204 = vsyncadd [#allocation11], 4294965248  ;;  %v3215_v0 = vmov 0.0   ;;  %v98_v1 = vld [vmem:[#allocation7 + $0x8] sm:$0xff]  ;;  %v100_v3 = vld [vmem:[#allocation7 + $0x18] sm:$0xff]  ;;  %vm3217_vm0 = vmmov 0  }
  0x4b   :  { %246 = vmatprep.mubr.f32.mxu0 %v3215_v0  ;;  %359 = vmatprep.mubr.f32.mxu1 %v3215_v0  ;;  %v102_v2 = vld [vmem:[#allocation7 + $0x28] sm:$0xff]  ;;  %v104_v5 = vld [vmem:[#allocation7 + $0x38] sm:$0xff]  ;;  %v97_v6 = vld [vmem:[#allocation7] sm:$0xff]  ;;  %s3218_s13 = smov [#allocation12]  }
  0x4c   :  { %v2251_v4 = vpack.c.bf16 %v102_v2, %v98_v1  ;;  %v101_v7 = vld [vmem:[#allocation7 + $0x20] sm:$0xff]  ;;  %v2283_v8 = vpack.c.bf16 %v104_v5, %v100_v3  ;;  %v99_v10 = vld [vmem:[#allocation7 + $0x10] sm:$0xff]  ;;  %v106_v12 = vld [vmem:[#allocation7 + $0x48] sm:$0xff]  ;;  %s2155_s14 = sshll.u32 %s3218_s13, 4  ;;  %s2156_s14 = int_to_ptr.vmem [resolvable:$true] %s2155_s14 }
  0x4d   :  { %v2253_v9 = vpack.c.bf16 %v101_v7, %v97_v6  ;;  %v103_v11 = vld [vmem:[#allocation7 + $0x30] sm:$0xff]  ;;  %v110_v14 = vld [vmem:[#allocation7 + $0x68] sm:$0xff]  ;;  %v108_v15 = vld [vmem:[#allocation7 + $0x58] sm:$0xff]  ;;  %s3177_s17 = scalar_lea.vmem %s2156_s14, 128  ;;  %p3182_p5 = scmp.lt.s32.totalorder %s2156_s14, %s2156_s14 }
  0x4e   :  { %2252 = vmatprep.subr.bf16.mxu0 %v2251_v4  ;;  %v2285_v13 = vpack.c.bf16 %v103_v11, %v99_v10  ;;  %v112_v16 = vld [vmem:[#allocation7 + $0x78] sm:$0xff]  ;;  %2284 = vmatprep.subr.bf16.mxu1 %v2283_v8  ;;  %v2255_v17 = vpack.c.bf16 %v110_v14, %v106_v12  ;;  %v105_v19 = vld [vmem:[#allocation7 + $0x40] sm:$0xff]  ;;  %v107_v21 = vld [vmem:[#allocation7 + $0x50] sm:$0xff]  ;;  %p3178_p4 = scmp.ne.s32.totalorder %s2156_s14, %s3177_s17  ;;  %p3183_p6 = scmp.lt.s32.totalorder %s3177_s17, %s3177_s17 }
  0x4f   :  { %2254 = vmatpush1.bf16.msra.mxu0 %v2253_v9  ;;  %v2287_v18 = vpack.c.bf16 %v112_v16, %v108_v15  ;;  %v109_v20 = vld [vmem:[#allocation7 + $0x60] sm:$0xff]  ;;  %v111_v23 = vld [vmem:[#allocation7 + $0x70] sm:$0xff]  ;;  %v114_v24 = vld [vmem:[#allocation7 + $0x88] sm:$0xff] }
  0x50   :  { %2286 = vmatpush1.bf16.msra.mxu1 %v2285_v13  ;;  %v2257_v22 = vpack.c.bf16 %v109_v20, %v105_v19  ;;  %v118_v25 = vld [vmem:[#allocation7 + $0xa8] sm:$0xff]  ;;  %2256 = vmatprep.subr.bf16.mxu0 %v2255_v17  ;;  %v2289_v26 = vpack.c.bf16 %v111_v23, %v107_v21  ;;  %v116_v28 = vld [vmem:[#allocation7 + $0x98] sm:$0xff]  ;;  %v113_v30 = vld [vmem:[#allocation7 + $0x80] sm:$0xff]  ;;  %p3184_p7 = por %p3183_p6, %p3182_p5 }
  0x51   :  { %2288 = vmatprep.subr.bf16.mxu1 %v2287_v18  ;;  %v2259_v27 = vpack.c.bf16 %v118_v25, %v114_v24  ;;  %v120_v29 = vld [vmem:[#allocation7 + $0xb8] sm:$0xff]  ;;  %v117_v32 = vld [vmem:[#allocation7 + $0xa0] sm:$0xff]  ;;  %v115_v33 = vld [vmem:[#allocation7 + $0x90] sm:$0xff] }
  0x52   :  { %v2291_v31 = vpack.c.bf16 %v120_v29, %v116_v28  ;;  %v119_v34 = vld [vmem:[#allocation7 + $0xb0] sm:$0xff]  ;;  %v2261_v35 = vpack.c.bf16 %v117_v32, %v113_v30  ;;  %v122_v36 = vld [vmem:[#allocation7 + $0xc8] sm:$0xff]  ;;  %v124_v38 = vld [vmem:[#allocation7 + $0xd8] sm:$0xff]  ;;  %p3185_p8 = pnand %p3184_p7, %p3178_p4 }
  0x53   :  { %2258 = vmatpush1.bf16.msra.mxu0 %v2257_v22  ;;  %v126_v37 = vld [vmem:[#allocation7 + $0xe8] sm:$0xff]  ;;  %v2293_v39 = vpack.c.bf16 %v119_v34, %v115_v33  ;;  %v128_v41 = vld [vmem:[#allocation7 + $0xf8] sm:$0xff]  ;;  %v121_v42 = vld [vmem:[#allocation7 + $0xc0] sm:$0xff] }
  0x54   :  { %2290 = vmatpush1.bf16.msra.mxu1 %v2289_v26  ;;  %2260 = vmatprep.subr.bf16.mxu0 %v2259_v27  ;;  %v2263_v40 = vpack.c.bf16 %v126_v37, %v122_v36  ;;  %v125_v43 = vld [vmem:[#allocation7 + $0xe0] sm:$0xff]  ;;  %v2295_v44 = vpack.c.bf16 %v128_v41, %v124_v38  ;;  %v123_v45 = vld [vmem:[#allocation7 + $0xd0] sm:$0xff]  ;;  %v130_v47 = vld [vmem:[#allocation7 + $0x108] sm:$0xff] }
  0x55   :  { %2292 = vmatprep.subr.bf16.mxu1 %v2291_v31  ;;  %v127_v46 = vld [vmem:[#allocation7 + $0xf0] sm:$0xff]  ;;  %v134_v48 = vld [vmem:[#allocation7 + $0x128] sm:$0xff]  ;;  %v132_v49 = vld [vmem:[#allocation7 + $0x118] sm:$0xff]  ;;  %v2265_v51 = vpack.c.bf16 %v125_v43, %v121_v42 }
  0x56   :  { %v136_v50 = vld [vmem:[#allocation7 + $0x138] sm:$0xff]  ;;  %v2297_v52 = vpack.c.bf16 %v127_v46, %v123_v45  ;;  %v2267_v53 = vpack.c.bf16 %v134_v48, %v130_v47  ;;  %v129_v54 = vld [vmem:[#allocation7 + $0x100] sm:$0xff]  ;;  %v131_v56 = vld [vmem:[#allocation7 + $0x110] sm:$0xff] }
  0x57   :  { %2262 = vmatpush1.bf16.msra.mxu0 %v2261_v35  ;;  %v133_v55 = vld [vmem:[#allocation7 + $0x120] sm:$0xff]  ;;  %v2299_v57 = vpack.c.bf16 %v136_v50, %v132_v49  ;;  %v135_v58 = vld [vmem:[#allocation7 + $0x130] sm:$0xff]  ;;  %v138_v59 = vld [vmem:[#allocation7 + $0x148] sm:$0xff] }
  0x58   :  { %2294 = vmatpush1.bf16.msra.mxu1 %v2293_v39  ;;  %2264 = vmatprep.subr.bf16.mxu0 %v2263_v40  ;;  %v142_v60 = vld [vmem:[#allocation7 + $0x168] sm:$0xff]  ;;  %v140_v61 = vld [vmem:[#allocation7 + $0x158] sm:$0xff]  ;;  %v2269_v63 = vpack.c.bf16 %v133_v55, %v129_v54  ;;  %v2301_v1 = vpack.c.bf16 %v135_v58, %v131_v56  ;;  %v137_v3 = vld [vmem:[#allocation7 + $0x140] sm:$0xff] }
  0x59   :  { %2296 = vmatprep.subr.bf16.mxu1 %v2295_v44  ;;  %v144_v62 = vld [vmem:[#allocation7 + $0x178] sm:$0xff]  ;;  %v2271_v2 = vpack.c.bf16 %v142_v60, %v138_v59  ;;  %v141_v4 = vld [vmem:[#allocation7 + $0x160] sm:$0xff]  ;;  %v139_v5 = vld [vmem:[#allocation7 + $0x150] sm:$0xff] }
  0x5a   :  { %v2303_v6 = vpack.c.bf16 %v144_v62, %v140_v61  ;;  %v143_v7 = vld [vmem:[#allocation7 + $0x170] sm:$0xff]  ;;  %v146_v8 = vld [vmem:[#allocation7 + $0x188] sm:$0xff]  ;;  %v148_v10 = vld [vmem:[#allocation7 + $0x198] sm:$0xff]  ;;  %v2273_v12 = vpack.c.bf16 %v141_v4, %v137_v3 }
  0x5b   :  { %2266 = vmatpush1.bf16.msra.mxu0 %v2265_v51  ;;  %v150_v9 = vld [vmem:[#allocation7 + $0x1a8] sm:$0xff]  ;;  %v152_v11 = vld [vmem:[#allocation7 + $0x1b8] sm:$0xff]  ;;  %v2305_v13 = vpack.c.bf16 %v143_v7, %v139_v5  ;;  %v145_v15 = vld [vmem:[#allocation7 + $0x180] sm:$0xff] }
  0x5c   :  { %2298 = vmatpush1.bf16.msra.mxu1 %v2297_v52  ;;  %2268 = vmatprep.subr.bf16.mxu0 %v2267_v53  ;;  %v2275_v14 = vpack.c.bf16 %v150_v9, %v146_v8  ;;  %v149_v16 = vld [vmem:[#allocation7 + $0x1a0] sm:$0xff]  ;;  %v147_v17 = vld [vmem:[#allocation7 + $0x190] sm:$0xff]  ;;  %v2307_v18 = vpack.c.bf16 %v152_v11, %v148_v10  ;;  %v154_v20 = vld [vmem:[#allocation7 + $0x1c8] sm:$0xff] }
  0x5d   :  { %2300 = vmatprep.subr.bf16.mxu1 %v2299_v57  ;;  %v151_v19 = vld [vmem:[#allocation7 + $0x1b0] sm:$0xff]  ;;  %v158_v21 = vld [vmem:[#allocation7 + $0x1e8] sm:$0xff]  ;;  %v156_v22 = vld [vmem:[#allocation7 + $0x1d8] sm:$0xff]  ;;  %v2277_v24 = vpack.c.bf16 %v149_v16, %v145_v15 }
  0x5e   :  { %v160_v23 = vld [vmem:[#allocation7 + $0x1f8] sm:$0xff]  ;;  %v2309_v25 = vpack.c.bf16 %v151_v19, %v147_v17  ;;  %v2279_v26 = vpack.c.bf16 %v158_v21, %v154_v20  ;;  %v153_v27 = vld [vmem:[#allocation7 + $0x1c0] sm:$0xff]  ;;  %v155_v29 = vld [vmem:[#allocation7 + $0x1d0] sm:$0xff] }
  0x5f   :  { %2270 = vmatpush1.bf16.msra.mxu0 %v2269_v63  ;;  %v157_v28 = vld [vmem:[#allocation7 + $0x1e0] sm:$0xff]  ;;  %v2311_v30 = vpack.c.bf16 %v160_v23, %v156_v22  ;;  %v159_v31 = vld [vmem:[#allocation7 + $0x1f0] sm:$0xff]  ;;  %v448_v32 = vld [vmem:[#allocation9 + $0x8] sm:$0xff] }
  0x60   :  { %2302 = vmatpush1.bf16.msra.mxu1 %v2301_v1  ;;  %2272 = vmatprep.subr.bf16.mxu0 %v2271_v2  ;;  %v452_v33 = vld [vmem:[#allocation9 + $0x28] sm:$0xff]  ;;  %v450_v34 = vld [vmem:[#allocation9 + $0x18] sm:$0xff]  ;;  %v2281_v36 = vpack.c.bf16 %v157_v28, %v153_v27  ;;  %v2313_v37 = vpack.c.bf16 %v159_v31, %v155_v29  ;;  %v447_v39 = vld [vmem:[#allocation9] sm:$0xff] }
  0x61   :  { %2304 = vmatprep.subr.bf16.mxu1 %v2303_v6  ;;  %v454_v35 = vld [vmem:[#allocation9 + $0x38] sm:$0xff]  ;;  %v3333_v38 = vpack.c.bf16 %v452_v33, %v448_v32  ;;  %v451_v40 = vld [vmem:[#allocation9 + $0x20] sm:$0xff]  ;;  %v449_v42 = vld [vmem:[#allocation9 + $0x10] sm:$0xff] }
  0x62   :  { %v3335_v41 = vpack.c.bf16 %v454_v35, %v450_v34  ;;  %v453_v43 = vld [vmem:[#allocation9 + $0x30] sm:$0xff]  ;;  %v456_v44 = vld [vmem:[#allocation9 + $0x48] sm:$0xff]  ;;  %v89_v46 = vld [vmem:[#allocation4] sm:$0xff]  ;;  %v3337_v47 = vpack.c.bf16 %v451_v40, %v447_v39 }
  0x63   :  { %2274 = vmatpush1.bf16.msra.mxu0 %v2273_v12  ;;  %v460_v45 = vld [vmem:[#allocation9 + $0x68] sm:$0xff]  ;;  %v458_v48 = vld [vmem:[#allocation9 + $0x58] sm:$0xff]  ;;  %v3340_v50 = vpack.c.bf16 %v453_v43, %v449_v42  ;;  %v455_v51 = vld [vmem:[#allocation9 + $0x40] sm:$0xff] }
  0x64   :  { %2306 = vmatpush1.bf16.msra.mxu1 %v2305_v13  ;;  %2276 = vmatprep.subr.bf16.mxu0 %v2275_v14  ;;  %v462_v49 = vld [vmem:[#allocation9 + $0x78] sm:$0xff]  ;;  %v459_v52 = vld [vmem:[#allocation9 + $0x60] sm:$0xff]  ;;  %v3343_v53 = vpack.c.bf16 %v460_v45, %v456_v44  ;;  %v457_v54 = vld [vmem:[#allocation9 + $0x50] sm:$0xff] }
  0x65   :  { %2308 = vmatprep.subr.bf16.mxu1 %v2307_v18  ;;  %v461_v55 = vld [vmem:[#allocation9 + $0x70] sm:$0xff]  ;;  %v3345_v56 = vpack.c.bf16 %v462_v49, %v458_v48  ;;  %v464_v57 = vld [vmem:[#allocation9 + $0x88] sm:$0xff]  ;;  %v3348_v60 = vpack.c.bf16 %v459_v52, %v455_v51  ;;  %v466_v61 = vld [vmem:[#allocation9 + $0x98] sm:$0xff] }
  0x66   :  { %v468_v58 = vld [vmem:[#allocation9 + $0xa8] sm:$0xff]  ;;  %v470_v62 = vld [vmem:[#allocation9 + $0xb8] sm:$0xff]  ;;  %v3352_v63 = vpack.c.bf16 %v461_v55, %v457_v54  ;;  %v463_v1 = vld [vmem:[#allocation9 + $0x80] sm:$0xff] }
  0x67   :  { %2278 = vmatpush1.bf16.msra.mxu0 %v2277_v24  ;;  %v90_v59 = vld [vmem:[#allocation4 + $0x8] sm:$0xff]  ;;  %v467_v2 = vld [vmem:[#allocation9 + $0xa0] sm:$0xff]  ;;  %v3356_v3 = vpack.c.bf16 %v468_v58, %v464_v57  ;;  %v465_v4 = vld [vmem:[#allocation9 + $0x90] sm:$0xff]  ;;  %v3359_v6 = vpack.c.bf16 %v470_v62, %v466_v61 }
  0x68   :  { %2310 = vmatpush1.bf16.msra.mxu1 %v2309_v25  ;;  %2280 = vmatprep.subr.bf16.mxu0 %v2279_v26  ;;  %v469_v5 = vld [vmem:[#allocation9 + $0xb0] sm:$0xff]  ;;  %v472_v7 = vld [vmem:[#allocation9 + $0xc8] sm:$0xff]  ;;  %v3362_v10 = vpack.c.bf16 %v467_v2, %v463_v1  ;;  %v474_v11 = vld [vmem:[#allocation9 + $0xd8] sm:$0xff] }
  0x69   :  { %2312 = vmatprep.subr.bf16.mxu1 %v2311_v30  ;;  %v476_v8 = vld [vmem:[#allocation9 + $0xe8] sm:$0xff]  ;;  %v91_v9 = vld [vmem:[#allocation4 + $0x10] sm:$0xff]  ;;  %v478_v12 = vld [vmem:[#allocation9 + $0xf8] sm:$0xff]  ;;  %v3366_v13 = vpack.c.bf16 %v469_v5, %v465_v4 }
  0x6a   :  { %v471_v14 = vld [vmem:[#allocation9 + $0xc0] sm:$0xff]  ;;  %v3370_v16 = vpack.c.bf16 %v476_v8, %v472_v7  ;;  %v473_v17 = vld [vmem:[#allocation9 + $0xd0] sm:$0xff]  ;;  %v3373_v19 = vpack.c.bf16 %v478_v12, %v474_v11  ;;  %v480_v20 = vld [vmem:[#allocation9 + $0x108] sm:$0xff] }
  0x6b   :  { %2282 = vmatpush1.bf16.msra.mxu0 %v2281_v36  ;;  %v475_v15 = vld [vmem:[#allocation9 + $0xe0] sm:$0xff]  ;;  %v477_v18 = vld [vmem:[#allocation9 + $0xf0] sm:$0xff]  ;;  %v484_v21 = vld [vmem:[#allocation9 + $0x128] sm:$0xff] }
  0x6c   :  { %2314 = vmatpush1.bf16.msra.mxu1 %v2313_v37  ;;  %2316 = vmatprep.subr.bf16.mxu0 %v3333_v38  ;;  %v92_v22 = vld [vmem:[#allocation4 + $0x18] sm:$0xff]  ;;  %v3376_v23 = vpack.c.bf16 %v475_v15, %v471_v14  ;;  %v3380_v26 = vpack.c.bf16 %v477_v18, %v473_v17  ;;  %v479_v27 = vld [vmem:[#allocation9 + $0x100] sm:$0xff]  ;;  %v3384_v29 = vpack.c.bf16 %v484_v21, %v480_v20  ;;  %v481_v30 = vld [vmem:[#allocation9 + $0x110] sm:$0xff] }
  0x6d   :  { %2348 = vmatprep.subr.bf16.mxu1 %v3335_v41  ;;  %v482_v24 = vld [vmem:[#allocation9 + $0x118] sm:$0xff]  ;;  %v483_v28 = vld [vmem:[#allocation9 + $0x120] sm:$0xff]  ;;  %v485_v31 = vld [vmem:[#allocation9 + $0x130] sm:$0xff] }
  0x6e   :  { %247 = vmatmul.mubr.f32.vlgmr.msra.gmra.mrb[0].mxu0 %v89_v46  ;;  %v486_v25 = vld [vmem:[#allocation9 + $0x138] sm:$0xff]  ;;  %v488_v33 = vld [vmem:[#allocation9 + $0x148] sm:$0xff]  ;;  %v93_v35 = vld [vmem:[#allocation4 + $0x20] sm:$0xff]  ;;  %v3390_v36 = vpack.c.bf16 %v483_v28, %v479_v27  ;;  %v3394_v40 = vpack.c.bf16 %v485_v31, %v481_v30  ;;  %v162_v28 = vlaneseq }
  0x6f   :  { %360 = vmatmul.mubr.f32.vlgmr.msra.gmra.mrb[0].mxu1 %v89_v46  ;;  %2318 = vmatpush1.bf16.msra.mxu0 %v3337_v47  ;;  %v3387_v32 = vpack.c.bf16 %v486_v25, %v482_v24  ;;  %v492_v34 = vld [vmem:[#allocation9 + $0x168] sm:$0xff]  ;;  %v490_v37 = vld [vmem:[#allocation9 + $0x158] sm:$0xff]  ;;  %v487_v42 = vld [vmem:[#allocation9 + $0x140] sm:$0xff] }
  0x70   :  { %2350 = vmatpush1.bf16.msra.mxu1 %v3340_v50  ;;  %252 = vmatprep.mubr.f32.mxu0 %v3215_v0  ;;  %v494_v39 = vld [vmem:[#allocation9 + $0x178] sm:$0xff]  ;;  %v491_v43 = vld [vmem:[#allocation9 + $0x160] sm:$0xff]  ;;  %v3398_v44 = vpack.c.bf16 %v492_v34, %v488_v33  ;;  %v489_v45 = vld [vmem:[#allocation9 + $0x150] sm:$0xff]  ;;  %v163_v30 = vshrl.u32 %v162_v28, 7 }
  0x71   :  { %365 = vmatprep.mubr.f32.mxu1 %v3215_v0  ;;  %2320 = vmatprep.subr.bf16.mxu0 %v3343_v53  ;;  %v493_v46 = vld [vmem:[#allocation9 + $0x170] sm:$0xff]  ;;  %v3401_v48 = vpack.c.bf16 %v494_v39, %v490_v37  ;;  %v496_v49 = vld [vmem:[#allocation9 + $0x188] sm:$0xff]  ;;  %v3404_v54 = vpack.c.bf16 %v491_v43, %v487_v42  ;;  %v498_v55 = vld [vmem:[#allocation9 + $0x198] sm:$0xff] }
  0x72   :  { %253 = vmatmul.mubr.f32.gmra.mrb[2].mxu0 %v90_v59  ;;  %2352 = vmatprep.subr.bf16.mxu1 %v3345_v56  ;;  %v500_v51 = vld [vmem:[#allocation9 + $0x1a8] sm:$0xff]  ;;  %v502_v57 = vld [vmem:[#allocation9 + $0x1b8] sm:$0xff]  ;;  %v3408_v58 = vpack.c.bf16 %v493_v46, %v489_v45  ;;  %v499_v61 = vld [vmem:[#allocation9 + $0x1a0] sm:$0xff]  ;;  %v164_v31 = vsub.s32 0, %v163_v30  ;;  %v168_v34 = vsub.s32 1, %v163_v30  ;;  %v176_v42 = vsub.s32 3, %v163_v30 }
  0x73   :  { %366 = vmatmul.mubr.f32.gmra.mrb[2].mxu1 %v90_v59  ;;  %2322 = vmatpush1.bf16.msra.mxu0 %v3348_v60  ;;  %v94_v52 = vld [vmem:[#allocation4 + $0x28] sm:$0xff]  ;;  %v495_v59 = vld [vmem:[#allocation9 + $0x180] sm:$0xff]  ;;  %v3412_v62 = vpack.c.bf16 %v500_v51, %v496_v49  ;;  %v497_v1 = vld [vmem:[#allocation9 + $0x190] sm:$0xff]  ;;  %v3415_v4 = vpack.c.bf16 %v502_v57, %v498_v55 }
  0x74   :  { %2354 = vmatpush1.bf16.msra.mxu1 %v3352_v63  ;;  %258 = vmatprep.mubr.f32.mxu0 %v3215_v0  ;;  %v501_v2 = vld [vmem:[#allocation9 + $0x1b0] sm:$0xff]  ;;  %v504_v5 = vld [vmem:[#allocation9 + $0x1c8] sm:$0xff]  ;;  %v506_v11 = vld [vmem:[#allocation9 + $0x1d8] sm:$0xff] }
  0x75   :  { %371 = vmatprep.mubr.f32.mxu1 %v3215_v0  ;;  %2324 = vmatprep.subr.bf16.mxu0 %v3356_v3  ;;  %v508_v7 = vld [vmem:[#allocation9 + $0x1e8] sm:$0xff]  ;;  %v95_v8 = vld [vmem:[#allocation4 + $0x30] sm:$0xff]  ;;  %v510_v12 = vld [vmem:[#allocation9 + $0x1f8] sm:$0xff]  ;;  %v3422_v14 = vpack.c.bf16 %v501_v2, %v497_v1 }
  0x76   :  { %259 = vmatmul.mubr.f32.gmra.mrb[4].mxu0 %v91_v9  ;;  %2356 = vmatprep.subr.bf16.mxu1 %v3359_v6  ;;  %v503_v15 = vld [vmem:[#allocation9 + $0x1c0] sm:$0xff]  ;;  %v3426_v18 = vpack.c.bf16 %v508_v7, %v504_v5  ;;  %v505_v20 = vld [vmem:[#allocation9 + $0x1d0] sm:$0xff]  ;;  %v96_v24 = vld [vmem:[#allocation4 + $0x38] sm:$0xff] }
  0x77   :  { %372 = vmatmul.mubr.f32.gmra.mrb[4].mxu1 %v91_v9  ;;  %2326 = vmatpush1.bf16.msra.mxu0 %v3362_v10  ;;  %v3418_v9 = vpack.c.bf16 %v499_v61, %v495_v59  ;;  %v507_v17 = vld [vmem:[#allocation9 + $0x1e0] sm:$0xff]  ;;  %v509_v21 = vld [vmem:[#allocation9 + $0x1f0] sm:$0xff]  ;;  %v172_v59 = vsub.s32 2, %v163_v30 }
  0x78   :  { %2358 = vmatpush1.bf16.msra.mxu1 %v3366_v13  ;;  %264 = vmatprep.mubr.f32.mxu0 %v3215_v0  ;;  %v3432_v25 = vpack.c.bf16 %v507_v17, %v503_v15  ;;  %v3436_v27 = vpack.c.bf16 %v509_v21, %v505_v20  ;;  %v86_v33 = vld [vmem:[%s3843_s3] sm:$0xf] }
  0x79   :  { %377 = vmatprep.mubr.f32.mxu1 %v3215_v0  ;;  %2328 = vmatprep.subr.bf16.mxu0 %v3370_v16  ;;  %v3488_v37 = vrot.slane %v86_v33, %v168_v34  ;;  %v3492_v57 = vrot.slane %v86_v33, %v176_v42  ;;  %v3495_v1 = vrot.slane %v86_v33, %v172_v59 }
  0x7a   :  { %265 = vmatmul.mubr.f32.gmra.mrb[6].mxu0 %v92_v22  ;;  %2360 = vmatprep.subr.bf16.mxu1 %v3373_v19 }
  0x7b   :  { %378 = vmatmul.mubr.f32.gmra.mrb[6].mxu1 %v92_v22  ;;  %2330 = vmatpush1.bf16.msra.mxu0 %v3376_v23  ;;  %v3429_v22 = vpack.c.bf16 %v510_v12, %v506_v11 }
  0x7c   :  { %2362 = vmatpush1.bf16.msra.mxu1 %v3380_v26  ;;  %270 = vmatprep.mubr.f32.mxu0 %v3215_v0 }
  0x7d   :  { %383 = vmatprep.mubr.f32.mxu1 %v3215_v0  ;;  %2332 = vmatprep.subr.bf16.mxu0 %v3384_v29 }
  0x7e   :  { %271 = vmatmul.mubr.f32.gmra.mrb[8].mxu0 %v93_v35  ;;  %2364 = vmatprep.subr.bf16.mxu1 %v3387_v32 }
  0x7f   :  { %384 = vmatmul.mubr.f32.gmra.mrb[8].mxu1 %v93_v35  ;;  %2334 = vmatpush1.bf16.msra.mxu0 %v3390_v36  ;;  %v3486_v35 = vrot.slane %v86_v33, %v164_v31 }
  0x80   :  { %2366 = vmatpush1.bf16.msra.mxu1 %v3394_v40  ;;  %276 = vmatprep.mubr.f32.mxu0 %v3215_v0 }
  0x81   :  { %389 = vmatprep.mubr.f32.mxu1 %v3215_v0  ;;  %2336 = vmatprep.subr.bf16.mxu0 %v3398_v44 }
  0x82   :  { %277 = vmatmul.mubr.f32.gmra.mrb[10].mxu0 %v94_v52  ;;  %2368 = vmatprep.subr.bf16.mxu1 %v3401_v48 }
  0x83   :  { %390 = vmatmul.mubr.f32.gmra.mrb[10].mxu1 %v94_v52  ;;  %2338 = vmatpush1.bf16.msra.mxu0 %v3404_v54 }
  0x84   :  { %2370 = vmatpush1.bf16.msra.mxu1 %v3408_v58  ;;  %282 = vmatprep.mubr.f32.mxu0 %v3215_v0 }
  0x85   :  { %395 = vmatprep.mubr.f32.mxu1 %v3215_v0  ;;  %2340 = vmatprep.subr.bf16.mxu0 %v3412_v62 }
  0x86   :  { %283 = vmatmul.mubr.f32.gmra.mrb[12].mxu0 %v95_v8  ;;  %2372 = vmatprep.subr.bf16.mxu1 %v3415_v4 }
  0x87   :  { %396 = vmatmul.mubr.f32.gmra.mrb[12].mxu1 %v95_v8  ;;  %2342 = vmatpush1.bf16.msra.mxu0 %v3418_v9 }
  0x88   :  { %2374 = vmatpush1.bf16.msra.mxu1 %v3422_v14  ;;  %288 = vmatprep.mubr.f32.mxu0 %v3215_v0 }
  0x89   :  { %401 = vmatprep.mubr.f32.mxu1 %v3215_v0  ;;  %2344 = vmatprep.subr.bf16.mxu0 %v3426_v18 }
  0x8a   :  { %289 = vmatmul.mubr.f32.gmra.mrb[14].mxu0 %v96_v24  ;;  %2376 = vmatprep.subr.bf16.mxu1 %v3429_v22 }
  0x8b   :  { %402 = vmatmul.mubr.f32.gmra.mrb[14].mxu1 %v96_v24  ;;  %2346 = vmatpush1.bf16.msra.mxu0 %v3432_v25 }
  0x8c   :  { %2378 = vmatpush1.bf16.msra.mxu1 %v3436_v27  ;;  %575 = vmatprep.mubr.f32.mxu0 %v3215_v0 }
  0x8d   :  { %646 = vmatprep.mubr.f32.mxu1 %v3215_v0  ;;  %2380 = vmatprep.subr.bf16.mxu0 %v3333_v38 }
  0x8e   :  { %576 = vmatmul.mubr.f32.vlgmr.msra.gmra.mrb[0].mxu0 %v3215_v0  ;;  %2412 = vmatprep.subr.bf16.mxu1 %v3335_v41 }
  0x8f   :  { %647 = vmatmul.mubr.f32.vlgmr.msra.gmra.mrb[0].mxu1 %v3215_v0  ;;  %2382 = vmatpush1.bf16.msra.mxu0 %v3337_v47 }
  0x90   :  { %2414 = vmatpush1.bf16.msra.mxu1 %v3340_v50  ;;  %2384 = vmatprep.subr.bf16.mxu0 %v3343_v53 }
  0x91   :  { %2416 = vmatprep.subr.bf16.mxu1 %v3345_v56  ;;  %773 = vmatprep.mubr.f32.mxu0 %v3215_v0 }
  0x92   :  { %844 = vmatprep.mubr.f32.mxu1 %v3215_v0 }
  0x93   :  { %2386 = vmatpush1.bf16.msra.mxu0 %v3348_v60 }
  0x94   :  { %2418 = vmatpush1.bf16.msra.mxu1 %v3352_v63  ;;  %2388 = vmatprep.subr.bf16.mxu0 %v3356_v3 }
  0x95   :  { %2420 = vmatprep.subr.bf16.mxu1 %v3359_v6 }
  0x97   :  { %2390 = vmatpush1.bf16.msra.mxu0 %v3362_v10 }
  0x98   :  { %2422 = vmatpush1.bf16.msra.mxu1 %v3366_v13  ;;  %2392 = vmatprep.subr.bf16.mxu0 %v3370_v16 }
  0x99   :  { %2424 = vmatprep.subr.bf16.mxu1 %v3373_v19 }
  0x9b   :  { %2394 = vmatpush1.bf16.msra.mxu0 %v3376_v23 }
  0x9c   :  { %2426 = vmatpush1.bf16.msra.mxu1 %v3380_v26  ;;  %2396 = vmatprep.subr.bf16.mxu0 %v3384_v29 }
  0x9d   :  { %2428 = vmatprep.subr.bf16.mxu1 %v3387_v32 }
  0x9f   :  { %2398 = vmatpush1.bf16.msra.mxu0 %v3390_v36 }
  0xa0   :  { %2430 = vmatpush1.bf16.msra.mxu1 %v3394_v40  ;;  %2400 = vmatprep.subr.bf16.mxu0 %v3398_v44 }
  0xa1   :  { %2432 = vmatprep.subr.bf16.mxu1 %v3401_v48 }
  0xa3   :  { %2402 = vmatpush1.bf16.msra.mxu0 %v3404_v54 }
  0xa4   :  { %2434 = vmatpush1.bf16.msra.mxu1 %v3408_v58  ;;  %2404 = vmatprep.subr.bf16.mxu0 %v3412_v62 }
  0xa5   :  { %2436 = vmatprep.subr.bf16.mxu1 %v3415_v4 }
  0xa7   :  { %2406 = vmatpush1.bf16.msra.mxu0 %v3418_v9 }
  0xa8   :  { %2438 = vmatpush1.bf16.msra.mxu1 %v3422_v14  ;;  %2408 = vmatprep.subr.bf16.mxu0 %v3426_v18 }
  0xa9   :  { %2440 = vmatprep.subr.bf16.mxu1 %v3429_v22 }
  0xab   :  { %2410 = vmatpush1.bf16.msra.mxu0 %v3432_v25 }
  0xac   :  { %2442 = vmatpush1.bf16.msra.mxu1 %v3436_v27  ;;  %2444 = vmatprep.subr.bf16.mxu0 %v3333_v38 }
  0xad   :  { %2476 = vmatprep.subr.bf16.mxu1 %v3335_v41 }
 0x161   :  { %v577_v39 = vpop.f32.mrb[0].mxu0 }
 0x162   :  { %v2851_v43 = vadd.f32 %v577_v39, %v3486_v35  ;;  %v648_v45 = vpop.f32.mrb[0].mxu1  ;;  %v579_v46 = vpop.f32.mrb[1].mxu0  ;;  %v3504_v39 = vld [vmem:[%s3844_s4] ss:$0 sm:$0xff] }
 0x163   :  { %v2852_v49 = vadd.f32 %v579_v46, %v3488_v37  ;;  %v650_v51 = vpop.f32.mrb[1].mxu1  ;;  %v2867_v5 = vadd.f32 %v648_v45, %v3495_v1 }
 0x164   :  { %v2173_v52 = vmul.f32 -1.442695, %v2851_v43  ;;  %v2868_v61 = vadd.f32 %v650_v51, %v3492_v57 }
 0x165   :  { %v2174_v55 = vmul.f32 -1.442695, %v2852_v49 }
 0x166   :  { %2927 = vpow2.f32 %v2173_v52  ;;  %v2175_v2 = vmul.f32 -1.442695, %v2868_v61 }
 0x167   :  { %2929 = vpow2.f32 %v2174_v55 }
 0x168   :  { %2931 = vpow2.f32 %v2175_v2 }
 0x169   :  { %2933 = vtanh.f32 %v2867_v5 }
 0x170   :  { %v2928_v7 = vpop.eup %2927 }
 0x171   :  { %v2930_v8 = vpop.eup %2929  ;;  %v660_v11 = vadd.f32 1.0, %v2928_v7 }
 0x172   :  { %v666_v12 = vadd.f32 1.0, %v2930_v8  ;;  %v2932_v15 = vpop.eup %2931 }
 0x173   :  { %2935 = vrcp.f32 %v660_v11  ;;  %v2934_v17 = vpop.eup %2933  ;;  %v673_v28 = vadd.f32 1.0, %v2932_v15 }
 0x174   :  { %2937 = vrcp.f32 %v666_v12 }
 0x175   :  { %2939 = vrcp.f32 %v673_v28 }
 0x17d   :  { %v2936_v20 = vpop.eup %2935 }
 0x17e   :  { %v2938_v21 = vpop.eup %2937  ;;  %v677_v24 = vmul.f32 %v2936_v20, %v2934_v17 }
 0x17f   :  { %v676_v30 = vmul.f32 0.0, %v2938_v21  ;;  %v2940_v33 = vpop.eup %2939 }
 0x181   :  { %v3498_v31 = vadd.f32 %v677_v24, %v676_v30 }
 0x183   :  { %2941 = vtanh.f32 %v3498_v31 }
 0x18d   :  { %v2942_v34 = vpop.eup %2941 }
 0x18e   :  { %v3506_v42 = vmul.f32 %v2942_v34, %v2940_v33 }
 0x190   :  { %774 = vmatmul.mubr.f32.vlgmr.msra.gmra.mrb[2].mxu0 %v3506_v42  ;;  %845 = vmatmul.mubr.f32.vlgmr.msra.gmra.mrb[2].mxu1 %v3506_v42  ;;  %v687_v43 = vmul.f32 %v3504_v39, %v3506_v42 }
 0x191   :  { %2446 = vmatpush1.bf16.msra.mxu0 %v3337_v47  ;;  %2478 = vmatpush1.bf16.msra.mxu1 %v3340_v50 }
 0x192   :  { %688 = vadd.xlane.f32.xlu0 %v687_v43  ;;  %2448 = vmatprep.subr.bf16.mxu0 %v3343_v53 }
 0x193   :  { %2480 = vmatprep.subr.bf16.mxu1 %v3345_v56  ;;  %966 = vmatprep.mubr.f32.mxu0 %v3215_v0 }
 0x194   :  { %1037 = vmatprep.mubr.f32.mxu1 %v3215_v0 }
 0x195   :  { %2450 = vmatpush1.bf16.msra.mxu0 %v3348_v60  ;;  %2482 = vmatpush1.bf16.msra.mxu1 %v3352_v63 }
 0x196   :  { %2452 = vmatprep.subr.bf16.mxu0 %v3356_v3  ;;  %2484 = vmatprep.subr.bf16.mxu1 %v3359_v6 }
 0x199   :  { %2454 = vmatpush1.bf16.msra.mxu0 %v3362_v10  ;;  %2486 = vmatpush1.bf16.msra.mxu1 %v3366_v13 }
 0x19a   :  { %2456 = vmatprep.subr.bf16.mxu0 %v3370_v16  ;;  %2488 = vmatprep.subr.bf16.mxu1 %v3373_v19 }
 0x19d   :  { %2458 = vmatpush1.bf16.msra.mxu0 %v3376_v23  ;;  %2490 = vmatpush1.bf16.msra.mxu1 %v3380_v26 }
 0x19e   :  { %2460 = vmatprep.subr.bf16.mxu0 %v3384_v29  ;;  %2492 = vmatprep.subr.bf16.mxu1 %v3387_v32 }
 0x1a1   :  { %2462 = vmatpush1.bf16.msra.mxu0 %v3390_v36  ;;  %2494 = vmatpush1.bf16.msra.mxu1 %v3394_v40 }
 0x1a2   :  { %2464 = vmatprep.subr.bf16.mxu0 %v3398_v44  ;;  %2496 = vmatprep.subr.bf16.mxu1 %v3401_v48 }
 0x1a5   :  { %2466 = vmatpush1.bf16.msra.mxu0 %v3404_v54  ;;  %2498 = vmatpush1.bf16.msra.mxu1 %v3408_v58 }
 0x1a6   :  { %2468 = vmatprep.subr.bf16.mxu0 %v3412_v62  ;;  %2500 = vmatprep.subr.bf16.mxu1 %v3415_v4 }
 0x1a9   :  { %2470 = vmatpush1.bf16.msra.mxu0 %v3418_v9  ;;  %2502 = vmatpush1.bf16.msra.mxu1 %v3422_v14 }
 0x1aa   :  { %2472 = vmatprep.subr.bf16.mxu0 %v3426_v18  ;;  %2504 = vmatprep.subr.bf16.mxu1 %v3429_v22 }
 0x1ad   :  { %2474 = vmatpush1.bf16.msra.mxu0 %v3432_v25  ;;  %2506 = vmatpush1.bf16.msra.mxu1 %v3436_v27 }
 0x1ae   :  { %2508 = vmatprep.subr.bf16.mxu0 %v3333_v38  ;;  %2540 = vmatprep.subr.bf16.mxu1 %v3335_v41 }
 0x263   :  { %v775_v45 = vpop.f32.mrb[2].mxu0  ;;  %v846_v46 = vpop.f32.mrb[2].mxu1 }
 0x264   :  { %v2853_v49 = vadd.f32 %v775_v45, %v3486_v35  ;;  %v777_v51 = vpop.f32.mrb[3].mxu0  ;;  %v848_v52 = vpop.f32.mrb[3].mxu1  ;;  %v2869_v7 = vadd.f32 %v846_v46, %v3495_v1 }
 0x265   :  { %v2854_v55 = vadd.f32 %v777_v51, %v3488_v37  ;;  %v2870_v2 = vadd.f32 %v848_v52, %v3492_v57 }
 0x266   :  { %v2177_v59 = vmul.f32 -1.442695, %v2853_v49 }
 0x267   :  { %v2178_v61 = vmul.f32 -1.442695, %v2854_v55  ;;  %v2179_v5 = vmul.f32 -1.442695, %v2870_v2 }
 0x268   :  { %2943 = vpow2.f32 %v2177_v59 }
 0x269   :  { %2945 = vpow2.f32 %v2178_v61 }
 0x26a   :  { %2947 = vpow2.f32 %v2179_v5 }
 0x26b   :  { %2949 = vtanh.f32 %v2869_v7 }
 0x272   :  { %v2944_v8 = vpop.eup %2943 }
 0x273   :  { %v2946_v11 = vpop.eup %2945  ;;  %v858_v12 = vadd.f32 1.0, %v2944_v8 }
 0x274   :  { %v864_v15 = vadd.f32 1.0, %v2946_v11  ;;  %v2948_v17 = vpop.eup %2947 }
 0x275   :  { %2951 = vrcp.f32 %v858_v12  ;;  %v2950_v20 = vpop.eup %2949  ;;  %v871_v30 = vadd.f32 1.0, %v2948_v17 }
 0x276   :  { %2953 = vrcp.f32 %v864_v15 }
 0x277   :  { %2955 = vrcp.f32 %v871_v30 }
 0x27f   :  { %v2952_v21 = vpop.eup %2951 }
 0x280   :  { %v2954_v24 = vpop.eup %2953  ;;  %v875_v28 = vmul.f32 %v2952_v21, %v2950_v20 }
 0x281   :  { %v874_v33 = vmul.f32 %v2954_v24, %v3498_v31  ;;  %v2956_v43 = vpop.eup %2955 }
 0x283   :  { %v3551_v34 = vadd.f32 %v875_v28, %v874_v33 }
 0x285   :  { %2957 = vtanh.f32 %v3551_v34 }
 0x28f   :  { %v2958_v45 = vpop.eup %2957 }
 0x290   :  { %v3554_v46 = vmul.f32 %v2958_v45, %v2956_v43 }
 0x292   :  { %967 = vmatmul.mubr.f32.vlgmr.msra.gmra.mrb[4].mxu0 %v3554_v46  ;;  %1038 = vmatmul.mubr.f32.vlgmr.msra.gmra.mrb[4].mxu1 %v3554_v46  ;;  %v879_v49 = vmul.f32 %v3504_v39, %v3554_v46 }
 0x293   :  { %2510 = vmatpush1.bf16.msra.mxu0 %v3337_v47  ;;  %2542 = vmatpush1.bf16.msra.mxu1 %v3340_v50 }
 0x294   :  { %880 = vadd.xlane.f32.xlu0 %v879_v49  ;;  %2512 = vmatprep.subr.bf16.mxu0 %v3343_v53 }
 0x295   :  { %2544 = vmatprep.subr.bf16.mxu1 %v3345_v56  ;;  %1159 = vmatprep.mubr.f32.mxu0 %v3215_v0 }
 0x296   :  { %1230 = vmatprep.mubr.f32.mxu1 %v3215_v0 }
 0x297   :  { %2514 = vmatpush1.bf16.msra.mxu0 %v3348_v60  ;;  %2546 = vmatpush1.bf16.msra.mxu1 %v3352_v63 }
 0x298   :  { %2516 = vmatprep.subr.bf16.mxu0 %v3356_v3  ;;  %2548 = vmatprep.subr.bf16.mxu1 %v3359_v6 }
 0x29b   :  { %2518 = vmatpush1.bf16.msra.mxu0 %v3362_v10  ;;  %2550 = vmatpush1.bf16.msra.mxu1 %v3366_v13 }
 0x29c   :  { %2520 = vmatprep.subr.bf16.mxu0 %v3370_v16  ;;  %2552 = vmatprep.subr.bf16.mxu1 %v3373_v19 }
 0x29f   :  { %2522 = vmatpush1.bf16.msra.mxu0 %v3376_v23  ;;  %2554 = vmatpush1.bf16.msra.mxu1 %v3380_v26 }
 0x2a0   :  { %2524 = vmatprep.subr.bf16.mxu0 %v3384_v29  ;;  %2556 = vmatprep.subr.bf16.mxu1 %v3387_v32 }
 0x2a3   :  { %2526 = vmatpush1.bf16.msra.mxu0 %v3390_v36  ;;  %2558 = vmatpush1.bf16.msra.mxu1 %v3394_v40 }
 0x2a4   :  { %2528 = vmatprep.subr.bf16.mxu0 %v3398_v44  ;;  %2560 = vmatprep.subr.bf16.mxu1 %v3401_v48 }
 0x2a7   :  { %2530 = vmatpush1.bf16.msra.mxu0 %v3404_v54  ;;  %2562 = vmatpush1.bf16.msra.mxu1 %v3408_v58 }
 0x2a8   :  { %2532 = vmatprep.subr.bf16.mxu0 %v3412_v62  ;;  %2564 = vmatprep.subr.bf16.mxu1 %v3415_v4 }
 0x2ab   :  { %2534 = vmatpush1.bf16.msra.mxu0 %v3418_v9  ;;  %2566 = vmatpush1.bf16.msra.mxu1 %v3422_v14 }
 0x2ac   :  { %2536 = vmatprep.subr.bf16.mxu0 %v3426_v18  ;;  %2568 = vmatprep.subr.bf16.mxu1 %v3429_v22 }
 0x2af   :  { %2538 = vmatpush1.bf16.msra.mxu0 %v3432_v25  ;;  %2570 = vmatpush1.bf16.msra.mxu1 %v3436_v27 }
 0x2b0   :  { %2572 = vmatprep.subr.bf16.mxu0 %v3333_v38  ;;  %2604 = vmatprep.subr.bf16.mxu1 %v3335_v41 }
 0x365   :  { %v968_v31 = vpop.f32.mrb[4].mxu0  ;;  %v1039_v51 = vpop.f32.mrb[4].mxu1 }
 0x366   :  { %v2855_v52 = vadd.f32 %v968_v31, %v3486_v35  ;;  %v970_v55 = vpop.f32.mrb[5].mxu0  ;;  %v1041_v59 = vpop.f32.mrb[5].mxu1  ;;  %v2871_v11 = vadd.f32 %v1039_v51, %v3495_v1 }
 0x367   :  { %v2856_v61 = vadd.f32 %v970_v55, %v3488_v37  ;;  %v2872_v7 = vadd.f32 %v1041_v59, %v3492_v57 }
 0x368   :  { %v2180_v2 = vmul.f32 -1.442695, %v2855_v52 }
 0x369   :  { %v2181_v5 = vmul.f32 -1.442695, %v2856_v61  ;;  %v2182_v8 = vmul.f32 -1.442695, %v2872_v7 }
 0x36a   :  { %2959 = vpow2.f32 %v2180_v2 }
 0x36b   :  { %2961 = vpow2.f32 %v2181_v5 }
 0x36c   :  { %2963 = vpow2.f32 %v2182_v8 }
 0x36d   :  { %2965 = vtanh.f32 %v2871_v11 }
 0x374   :  { %v2960_v12 = vpop.eup %2959 }
 0x375   :  { %v2962_v15 = vpop.eup %2961  ;;  %v1051_v17 = vadd.f32 1.0, %v2960_v12 }
 0x376   :  { %v1057_v20 = vadd.f32 1.0, %v2962_v15  ;;  %v2964_v21 = vpop.eup %2963 }
 0x377   :  { %2967 = vrcp.f32 %v1051_v17  ;;  %v2966_v24 = vpop.eup %2965  ;;  %v1064_v43 = vadd.f32 1.0, %v2964_v21 }
 0x378   :  { %2969 = vrcp.f32 %v1057_v20 }
 0x379   :  { %2971 = vrcp.f32 %v1064_v43 }
 0x381   :  { %v2968_v28 = vpop.eup %2967 }
 0x382   :  { %v2970_v30 = vpop.eup %2969  ;;  %v1068_v33 = vmul.f32 %v2968_v28, %v2966_v24 }
 0x383   :  { %v1067_v45 = vmul.f32 %v2970_v30, %v3551_v34  ;;  %v2972_v31 = vpop.eup %2971 }
 0x385   :  { %v3599_v49 = vadd.f32 %v1068_v33, %v1067_v45 }
 0x387   :  { %2973 = vtanh.f32 %v3599_v49 }
 0x391   :  { %v2974_v51 = vpop.eup %2973 }
 0x392   :  { %v3602_v52 = vmul.f32 %v2974_v51, %v2972_v31 }
 0x394   :  { %1160 = vmatmul.mubr.f32.vlgmr.msra.gmra.mrb[6].mxu0 %v3602_v52  ;;  %1231 = vmatmul.mubr.f32.vlgmr.msra.gmra.mrb[6].mxu1 %v3602_v52  ;;  %v1072_v55 = vmul.f32 %v3504_v39, %v3602_v52 }
 0x395   :  { %2574 = vmatpush1.bf16.msra.mxu0 %v3337_v47  ;;  %2606 = vmatpush1.bf16.msra.mxu1 %v3340_v50 }
 0x396   :  { %1073 = vadd.xlane.f32.xlu1 %v1072_v55  ;;  %2576 = vmatprep.subr.bf16.mxu0 %v3343_v53 }
 0x397   :  { %2608 = vmatprep.subr.bf16.mxu1 %v3345_v56  ;;  %1352 = vmatprep.mubr.f32.mxu0 %v3215_v0 }
 0x398   :  { %1423 = vmatprep.mubr.f32.mxu1 %v3215_v0 }
 0x399   :  { %2578 = vmatpush1.bf16.msra.mxu0 %v3348_v60  ;;  %2610 = vmatpush1.bf16.msra.mxu1 %v3352_v63 }
 0x39a   :  { %2580 = vmatprep.subr.bf16.mxu0 %v3356_v3  ;;  %2612 = vmatprep.subr.bf16.mxu1 %v3359_v6 }
 0x39d   :  { %2582 = vmatpush1.bf16.msra.mxu0 %v3362_v10  ;;  %2614 = vmatpush1.bf16.msra.mxu1 %v3366_v13 }
 0x39e   :  { %2584 = vmatprep.subr.bf16.mxu0 %v3370_v16  ;;  %2616 = vmatprep.subr.bf16.mxu1 %v3373_v19 }
 0x3a1   :  { %2586 = vmatpush1.bf16.msra.mxu0 %v3376_v23  ;;  %2618 = vmatpush1.bf16.msra.mxu1 %v3380_v26 }
 0x3a2   :  { %2588 = vmatprep.subr.bf16.mxu0 %v3384_v29  ;;  %2620 = vmatprep.subr.bf16.mxu1 %v3387_v32 }
 0x3a5   :  { %2590 = vmatpush1.bf16.msra.mxu0 %v3390_v36  ;;  %2622 = vmatpush1.bf16.msra.mxu1 %v3394_v40 }
 0x3a6   :  { %2592 = vmatprep.subr.bf16.mxu0 %v3398_v44  ;;  %2624 = vmatprep.subr.bf16.mxu1 %v3401_v48 }
 0x3a9   :  { %2594 = vmatpush1.bf16.msra.mxu0 %v3404_v54  ;;  %2626 = vmatpush1.bf16.msra.mxu1 %v3408_v58 }
 0x3aa   :  { %2596 = vmatprep.subr.bf16.mxu0 %v3412_v62  ;;  %2628 = vmatprep.subr.bf16.mxu1 %v3415_v4 }
 0x3ad   :  { %2598 = vmatpush1.bf16.msra.mxu0 %v3418_v9  ;;  %2630 = vmatpush1.bf16.msra.mxu1 %v3422_v14 }
 0x3ae   :  { %2600 = vmatprep.subr.bf16.mxu0 %v3426_v18  ;;  %2632 = vmatprep.subr.bf16.mxu1 %v3429_v22 }
 0x3b1   :  { %2602 = vmatpush1.bf16.msra.mxu0 %v3432_v25  ;;  %2634 = vmatpush1.bf16.msra.mxu1 %v3436_v27 }
 0x3b2   :  { %2636 = vmatprep.subr.bf16.mxu0 %v3333_v38  ;;  %2668 = vmatprep.subr.bf16.mxu1 %v3335_v41 }
 0x467   :  { %v1161_v34 = vpop.f32.mrb[6].mxu0  ;;  %v1232_v59 = vpop.f32.mrb[6].mxu1 }
 0x468   :  { %v2857_v61 = vadd.f32 %v1161_v34, %v3486_v35  ;;  %v1163_v2 = vpop.f32.mrb[7].mxu0  ;;  %v1234_v5 = vpop.f32.mrb[7].mxu1  ;;  %v2873_v17 = vadd.f32 %v1232_v59, %v3495_v1 }
 0x469   :  { %v2858_v7 = vadd.f32 %v1163_v2, %v3488_v37  ;;  %v2874_v12 = vadd.f32 %v1234_v5, %v3492_v57 }
 0x46a   :  { %v2183_v8 = vmul.f32 -1.442695, %v2857_v61 }
 0x46b   :  { %v2184_v11 = vmul.f32 -1.442695, %v2858_v7  ;;  %v2185_v15 = vmul.f32 -1.442695, %v2874_v12 }
 0x46c   :  { %2975 = vpow2.f32 %v2183_v8 }
 0x46d   :  { %2977 = vpow2.f32 %v2184_v11 }
 0x46e   :  { %2979 = vpow2.f32 %v2185_v15 }
 0x46f   :  { %2981 = vtanh.f32 %v2873_v17 }
 0x476   :  { %v2976_v20 = vpop.eup %2975 }
 0x477   :  { %v2978_v21 = vpop.eup %2977  ;;  %v1244_v24 = vadd.f32 1.0, %v2976_v20 }
 0x478   :  { %v1250_v28 = vadd.f32 1.0, %v2978_v21  ;;  %v2980_v30 = vpop.eup %2979 }
 0x479   :  { %2983 = vrcp.f32 %v1244_v24  ;;  %v2982_v33 = vpop.eup %2981  ;;  %v1257_v51 = vadd.f32 1.0, %v2980_v30 }
 0x47a   :  { %2985 = vrcp.f32 %v1250_v28 }
 0x47b   :  { %2987 = vrcp.f32 %v1257_v51 }
 0x483   :  { %v2984_v43 = vpop.eup %2983 }
 0x484   :  { %v2986_v45 = vpop.eup %2985  ;;  %v1261_v31 = vmul.f32 %v2984_v43, %v2982_v33 }
 0x485   :  { %v1260_v55 = vmul.f32 %v2986_v45, %v3599_v49  ;;  %v2988_v59 = vpop.eup %2987 }
 0x487   :  { %v3647_v34 = vadd.f32 %v1261_v31, %v1260_v55 }
 0x489   :  { %2989 = vtanh.f32 %v3647_v34 }
 0x493   :  { %v2990_v61 = vpop.eup %2989 }
 0x494   :  { %v3650_v2 = vmul.f32 %v2990_v61, %v2988_v59 }
 0x496   :  { %1353 = vmatmul.mubr.f32.vlgmr.msra.gmra.mrb[8].mxu0 %v3650_v2  ;;  %1424 = vmatmul.mubr.f32.vlgmr.msra.gmra.mrb[8].mxu1 %v3650_v2  ;;  %v1265_v5 = vmul.f32 %v3504_v39, %v3650_v2 }
 0x497   :  { %2638 = vmatpush1.bf16.msra.mxu0 %v3337_v47  ;;  %2670 = vmatpush1.bf16.msra.mxu1 %v3340_v50 }
 0x498   :  { %1266 = vadd.xlane.f32.xlu1 %v1265_v5  ;;  %2640 = vmatprep.subr.bf16.mxu0 %v3343_v53 }
 0x499   :  { %2672 = vmatprep.subr.bf16.mxu1 %v3345_v56  ;;  %1545 = vmatprep.mubr.f32.mxu0 %v3215_v0 }
 0x49a   :  { %1616 = vmatprep.mubr.f32.mxu1 %v3215_v0 }
 0x49b   :  { %2642 = vmatpush1.bf16.msra.mxu0 %v3348_v60  ;;  %2674 = vmatpush1.bf16.msra.mxu1 %v3352_v63 }
 0x49c   :  { %2644 = vmatprep.subr.bf16.mxu0 %v3356_v3  ;;  %2676 = vmatprep.subr.bf16.mxu1 %v3359_v6 }
 0x49f   :  { %2646 = vmatpush1.bf16.msra.mxu0 %v3362_v10  ;;  %2678 = vmatpush1.bf16.msra.mxu1 %v3366_v13 }
 0x4a0   :  { %2648 = vmatprep.subr.bf16.mxu0 %v3370_v16  ;;  %2680 = vmatprep.subr.bf16.mxu1 %v3373_v19 }
 0x4a3   :  { %2650 = vmatpush1.bf16.msra.mxu0 %v3376_v23  ;;  %2682 = vmatpush1.bf16.msra.mxu1 %v3380_v26 }
 0x4a4   :  { %2652 = vmatprep.subr.bf16.mxu0 %v3384_v29  ;;  %2684 = vmatprep.subr.bf16.mxu1 %v3387_v32 }
 0x4a7   :  { %2654 = vmatpush1.bf16.msra.mxu0 %v3390_v36  ;;  %2686 = vmatpush1.bf16.msra.mxu1 %v3394_v40 }
 0x4a8   :  { %2656 = vmatprep.subr.bf16.mxu0 %v3398_v44  ;;  %2688 = vmatprep.subr.bf16.mxu1 %v3401_v48 }
 0x4ab   :  { %2658 = vmatpush1.bf16.msra.mxu0 %v3404_v54  ;;  %2690 = vmatpush1.bf16.msra.mxu1 %v3408_v58 }
 0x4ac   :  { %2660 = vmatprep.subr.bf16.mxu0 %v3412_v62  ;;  %2692 = vmatprep.subr.bf16.mxu1 %v3415_v4 }
 0x4af   :  { %2662 = vmatpush1.bf16.msra.mxu0 %v3418_v9  ;;  %2694 = vmatpush1.bf16.msra.mxu1 %v3422_v14 }
 0x4b0   :  { %2664 = vmatprep.subr.bf16.mxu0 %v3426_v18  ;;  %2696 = vmatprep.subr.bf16.mxu1 %v3429_v22 }
 0x4b3   :  { %2666 = vmatpush1.bf16.msra.mxu0 %v3432_v25  ;;  %2698 = vmatpush1.bf16.msra.mxu1 %v3436_v27 }
 0x4b4   :  { %2700 = vmatprep.subr.bf16.mxu0 %v3333_v38  ;;  %2732 = vmatprep.subr.bf16.mxu1 %v3335_v41 }
 0x569   :  { %v1354_v49 = vpop.f32.mrb[8].mxu0  ;;  %v1425_v7 = vpop.f32.mrb[8].mxu1 }
 0x56a   :  { %v2859_v8 = vadd.f32 %v1354_v49, %v3486_v35  ;;  %v1356_v11 = vpop.f32.mrb[9].mxu0  ;;  %v1427_v12 = vpop.f32.mrb[9].mxu1  ;;  %v2875_v28 = vadd.f32 %v1425_v7, %v3495_v1 }
 0x56b   :  { %v2860_v15 = vadd.f32 %v1356_v11, %v3488_v37  ;;  %v2876_v21 = vadd.f32 %v1427_v12, %v3492_v57 }
 0x56c   :  { %v2186_v17 = vmul.f32 -1.442695, %v2859_v8 }
 0x56d   :  { %v2187_v20 = vmul.f32 -1.442695, %v2860_v15  ;;  %v2188_v24 = vmul.f32 -1.442695, %v2876_v21 }
 0x56e   :  { %2991 = vpow2.f32 %v2186_v17 }
 0x56f   :  { %2993 = vpow2.f32 %v2187_v20 }
 0x570   :  { %2995 = vpow2.f32 %v2188_v24 }
 0x571   :  { %2997 = vtanh.f32 %v2875_v28 }
 0x578   :  { %v2992_v30 = vpop.eup %2991 }
 0x579   :  { %v2994_v33 = vpop.eup %2993  ;;  %v1437_v43 = vadd.f32 1.0, %v2992_v30 }
 0x57a   :  { %v1443_v45 = vadd.f32 1.0, %v2994_v33  ;;  %v2996_v31 = vpop.eup %2995 }
 0x57b   :  { %2999 = vrcp.f32 %v1437_v43  ;;  %v2998_v51 = vpop.eup %2997  ;;  %v1450_v5 = vadd.f32 1.0, %v2996_v31 }
 0x57c   :  { %3001 = vrcp.f32 %v1443_v45 }
 0x57d   :  { %3003 = vrcp.f32 %v1450_v5 }
 0x585   :  { %v3000_v55 = vpop.eup %2999 }
 0x586   :  { %v3002_v59 = vpop.eup %3001  ;;  %v1454_v61 = vmul.f32 %v3000_v55, %v2998_v51 }
 0x587   :  { %v1453_v49 = vmul.f32 %v3002_v59, %v3647_v34  ;;  %v3004_v7 = vpop.eup %3003 }
 0x589   :  { %v3695_v8 = vadd.f32 %v1454_v61, %v1453_v49 }
 0x58b   :  { %3005 = vtanh.f32 %v3695_v8 }
 0x595   :  { %v3006_v11 = vpop.eup %3005 }
 0x596   :  { %v3698_v12 = vmul.f32 %v3006_v11, %v3004_v7 }
 0x598   :  { %1546 = vmatmul.mubr.f32.vlgmr.msra.gmra.mrb[10].mxu0 %v3698_v12  ;;  %1617 = vmatmul.mubr.f32.vlgmr.msra.gmra.mrb[10].mxu1 %v3698_v12  ;;  %v1458_v15 = vmul.f32 %v3504_v39, %v3698_v12 }
 0x599   :  { %2702 = vmatpush1.bf16.msra.mxu0 %v3337_v47  ;;  %2734 = vmatpush1.bf16.msra.mxu1 %v3340_v50 }
 0x59a   :  { %1459 = vadd.xlane.f32.xlu0 %v1458_v15  ;;  %2704 = vmatprep.subr.bf16.mxu0 %v3343_v53 }
 0x59b   :  { %2736 = vmatprep.subr.bf16.mxu1 %v3345_v56  ;;  %1738 = vmatprep.mubr.f32.mxu0 %v3215_v0 }
 0x59c   :  { %1809 = vmatprep.mubr.f32.mxu1 %v3215_v0 }
 0x59d   :  { %2706 = vmatpush1.bf16.msra.mxu0 %v3348_v60  ;;  %2738 = vmatpush1.bf16.msra.mxu1 %v3352_v63 }
 0x59e   :  { %2708 = vmatprep.subr.bf16.mxu0 %v3356_v3  ;;  %2740 = vmatprep.subr.bf16.mxu1 %v3359_v6 }
 0x5a1   :  { %2710 = vmatpush1.bf16.msra.mxu0 %v3362_v10  ;;  %2742 = vmatpush1.bf16.msra.mxu1 %v3366_v13 }
 0x5a2   :  { %2712 = vmatprep.subr.bf16.mxu0 %v3370_v16  ;;  %2744 = vmatprep.subr.bf16.mxu1 %v3373_v19 }
 0x5a5   :  { %2714 = vmatpush1.bf16.msra.mxu0 %v3376_v23  ;;  %2746 = vmatpush1.bf16.msra.mxu1 %v3380_v26 }
 0x5a6   :  { %2716 = vmatprep.subr.bf16.mxu0 %v3384_v29  ;;  %2748 = vmatprep.subr.bf16.mxu1 %v3387_v32 }
 0x5a9   :  { %2718 = vmatpush1.bf16.msra.mxu0 %v3390_v36  ;;  %2750 = vmatpush1.bf16.msra.mxu1 %v3394_v40 }
 0x5aa   :  { %2720 = vmatprep.subr.bf16.mxu0 %v3398_v44  ;;  %2752 = vmatprep.subr.bf16.mxu1 %v3401_v48 }
 0x5ad   :  { %2722 = vmatpush1.bf16.msra.mxu0 %v3404_v54  ;;  %2754 = vmatpush1.bf16.msra.mxu1 %v3408_v58 }
 0x5ae   :  { %2724 = vmatprep.subr.bf16.mxu0 %v3412_v62  ;;  %2756 = vmatprep.subr.bf16.mxu1 %v3415_v4 }
 0x5b1   :  { %2726 = vmatpush1.bf16.msra.mxu0 %v3418_v9  ;;  %2758 = vmatpush1.bf16.msra.mxu1 %v3422_v14 }
 0x5b2   :  { %2728 = vmatprep.subr.bf16.mxu0 %v3426_v18  ;;  %2760 = vmatprep.subr.bf16.mxu1 %v3429_v22 }
 0x5b5   :  { %2730 = vmatpush1.bf16.msra.mxu0 %v3432_v25  ;;  %2762 = vmatpush1.bf16.msra.mxu1 %v3436_v27 }
 0x5b6   :  { %2764 = vmatprep.subr.bf16.mxu0 %v3333_v38  ;;  %2796 = vmatprep.subr.bf16.mxu1 %v3335_v41 }
 0x66b   :  { %v1547_v34 = vpop.f32.mrb[10].mxu0  ;;  %v1618_v17 = vpop.f32.mrb[10].mxu1 }
 0x66c   :  { %v2861_v20 = vadd.f32 %v1547_v34, %v3486_v35  ;;  %v1549_v21 = vpop.f32.mrb[11].mxu0  ;;  %v1620_v24 = vpop.f32.mrb[11].mxu1  ;;  %v2877_v31 = vadd.f32 %v1618_v17, %v3495_v1 }
 0x66d   :  { %v2862_v28 = vadd.f32 %v1549_v21, %v3488_v37  ;;  %v2878_v43 = vadd.f32 %v1620_v24, %v3492_v57 }
 0x66e   :  { %v2189_v30 = vmul.f32 -1.442695, %v2861_v20 }
 0x66f   :  { %v2190_v33 = vmul.f32 -1.442695, %v2862_v28  ;;  %v2191_v45 = vmul.f32 -1.442695, %v2878_v43 }
 0x670   :  { %3007 = vpow2.f32 %v2189_v30 }
 0x671   :  { %3009 = vpow2.f32 %v2190_v33 }
 0x672   :  { %3011 = vpow2.f32 %v2191_v45 }
 0x673   :  { %3013 = vtanh.f32 %v2877_v31 }
 0x67a   :  { %v3008_v38 = vpop.eup %3007 }
 0x67b   :  { %v3010_v51 = vpop.eup %3009  ;;  %v1630_v41 = vadd.f32 1.0, %v3008_v38 }
 0x67c   :  { %v1636_v55 = vadd.f32 1.0, %v3010_v51  ;;  %v3012_v59 = vpop.eup %3011 }
 0x67d   :  { %3015 = vrcp.f32 %v1630_v41  ;;  %v3014_v61 = vpop.eup %3013  ;;  %v1643_v11 = vadd.f32 1.0, %v3012_v59 }
 0x67e   :  { %3017 = vrcp.f32 %v1636_v55 }
 0x67f   :  { %3019 = vrcp.f32 %v1643_v11 }
 0x687   :  { %v3016_v5 = vpop.eup %3015 }
 0x688   :  { %v3018_v49 = vpop.eup %3017  ;;  %v1647_v7 = vmul.f32 %v3016_v5, %v3014_v61 }
 0x689   :  { %v1646_v15 = vmul.f32 %v3018_v49, %v3695_v8  ;;  %v3020_v17 = vpop.eup %3019 }
 0x68b   :  { %v3743_v34 = vadd.f32 %v1647_v7, %v1646_v15 }
 0x68d   :  { %3021 = vtanh.f32 %v3743_v34 }
 0x697   :  { %v3022_v20 = vpop.eup %3021 }
 0x698   :  { %v3746_v21 = vmul.f32 %v3022_v20, %v3020_v17  ;;  %v2055_v20 = vld [vmem:[#allocation10] sm:$0xff] }
 0x69a   :  { %1739 = vmatmul.mubr.f32.vlgmr.msra.gmra.mrb[12].mxu0 %v3746_v21  ;;  %1810 = vmatmul.mubr.f32.vlgmr.msra.gmra.mrb[12].mxu1 %v3746_v21  ;;  %v1651_v24 = vmul.f32 %v3504_v39, %v3746_v21 }
 0x69b   :  { %2766 = vmatpush1.bf16.msra.mxu0 %v3337_v47  ;;  %2798 = vmatpush1.bf16.msra.mxu1 %v3340_v50 }
 0x69c   :  { %1652 = vadd.xlane.f32.xlu1 %v1651_v24  ;;  %2768 = vmatprep.subr.bf16.mxu0 %v3343_v53  ;;  %v2056_v24 = vld [vmem:[#allocation10 + $0x8] sm:$0xff] }
 0x69d   :  { %2800 = vmatprep.subr.bf16.mxu1 %v3345_v56  ;;  %1931 = vmatprep.mubr.f32.mxu0 %v3215_v0 }
 0x69e   :  { %2002 = vmatprep.mubr.f32.mxu1 %v3215_v0 }
 0x69f   :  { %2770 = vmatpush1.bf16.msra.mxu0 %v3348_v60  ;;  %2802 = vmatpush1.bf16.msra.mxu1 %v3352_v63 }
 0x6a0   :  { %2772 = vmatprep.subr.bf16.mxu0 %v3356_v3  ;;  %2804 = vmatprep.subr.bf16.mxu1 %v3359_v6 }
 0x6a3   :  { %2774 = vmatpush1.bf16.msra.mxu0 %v3362_v10  ;;  %2806 = vmatpush1.bf16.msra.mxu1 %v3366_v13 }
 0x6a4   :  { %2776 = vmatprep.subr.bf16.mxu0 %v3370_v16  ;;  %2808 = vmatprep.subr.bf16.mxu1 %v3373_v19 }
 0x6a7   :  { %2778 = vmatpush1.bf16.msra.mxu0 %v3376_v23  ;;  %2810 = vmatpush1.bf16.msra.mxu1 %v3380_v26 }
 0x6a8   :  { %2780 = vmatprep.subr.bf16.mxu0 %v3384_v29  ;;  %2812 = vmatprep.subr.bf16.mxu1 %v3387_v32 }
 0x6ab   :  { %2782 = vmatpush1.bf16.msra.mxu0 %v3390_v36  ;;  %2814 = vmatpush1.bf16.msra.mxu1 %v3394_v40 }
 0x6ac   :  { %2784 = vmatprep.subr.bf16.mxu0 %v3398_v44  ;;  %2816 = vmatprep.subr.bf16.mxu1 %v3401_v48 }
 0x6af   :  { %2786 = vmatpush1.bf16.msra.mxu0 %v3404_v54  ;;  %2818 = vmatpush1.bf16.msra.mxu1 %v3408_v58 }
 0x6b0   :  { %2788 = vmatprep.subr.bf16.mxu0 %v3412_v62  ;;  %2820 = vmatprep.subr.bf16.mxu1 %v3415_v4 }
 0x6b3   :  { %2790 = vmatpush1.bf16.msra.mxu0 %v3418_v9  ;;  %2822 = vmatpush1.bf16.msra.mxu1 %v3422_v14 }
 0x6b4   :  { %2792 = vmatprep.subr.bf16.mxu0 %v3426_v18  ;;  %2824 = vmatprep.subr.bf16.mxu1 %v3429_v22 }
 0x6b7   :  { %2794 = vmatpush1.bf16.msra.mxu0 %v3432_v25  ;;  %2826 = vmatpush1.bf16.msra.mxu1 %v3436_v27 }
 0x76d   :  { %v1740_v47 = vpop.f32.mrb[12].mxu0  ;;  %v1811_v50 = vpop.f32.mrb[12].mxu1 }
 0x76e   :  { %v2863_v53 = vadd.f32 %v1740_v47, %v3486_v35  ;;  %v1742_v56 = vpop.f32.mrb[13].mxu0  ;;  %v1813_v60 = vpop.f32.mrb[13].mxu1  ;;  %v2879_v16 = vadd.f32 %v1811_v50, %v3495_v1  ;;  %v2828_v47 = vpack.c.bf16 %v2056_v24, %v2055_v20  ;;  %v3216_v50 = vmov 0.0|0.0  }
 0x76f   :  { %v2864_v63 = vadd.f32 %v1742_v56, %v3488_v37  ;;  %v2880_v10 = vadd.f32 %v1813_v60, %v3492_v57  ;;  %2827 = vmatprep.subr.bf16.mxu0 %v3216_v50  ;;  %v2058_v56 = vld [vmem:[#allocation10 + $0x18] sm:$0xff] }
 0x770   :  { %v2192_v3 = vmul.f32 -1.442695, %v2863_v53  ;;  %v2057_v53 = vld [vmem:[#allocation10 + $0x10] sm:$0xff] }
 0x771   :  { %v2193_v6 = vmul.f32 -1.442695, %v2864_v63  ;;  %v2194_v13 = vmul.f32 -1.442695, %v2880_v10  ;;  %v2831_v60 = vpack.c.bf16 %v2058_v56, %v2057_v53  ;;  %v2059_v63 = vld [vmem:[#allocation10 + $0x20] sm:$0xff]  ;;  %v2061_v10 = vld [vmem:[#allocation10 + $0x30] sm:$0xff] }
 0x772   :  { %3023 = vpow2.f32 %v2192_v3  ;;  %v2060_v3 = vld [vmem:[#allocation10 + $0x28] sm:$0xff] }
 0x773   :  { %3025 = vpow2.f32 %v2193_v6  ;;  %v2834_v6 = vpack.c.bf16 %v2060_v3, %v2059_v63 }
 0x774   :  { %3027 = vpow2.f32 %v2194_v13 }
 0x775   :  { %3029 = vtanh.f32 %v2879_v16  ;;  %v2063_v16 = vld [vmem:[#allocation10 + $0x40] sm:$0xff] }
 0x77c   :  { %v3024_v19 = vpop.eup %3023 }
 0x77d   :  { %v3026_v23 = vpop.eup %3025  ;;  %v1823_v26 = vadd.f32 1.0, %v3024_v19  ;;  %v2064_v19 = vld [vmem:[#allocation10 + $0x48] sm:$0xff] }
 0x77e   :  { %v1829_v29 = vadd.f32 1.0, %v3026_v23  ;;  %v3028_v32 = vpop.eup %3027  ;;  %v2840_v23 = vpack.c.bf16 %v2064_v19, %v2063_v16 }
 0x77f   :  { %3031 = vrcp.f32 %v1823_v26  ;;  %v3030_v36 = vpop.eup %3029  ;;  %v1836_v54 = vadd.f32 1.0, %v3028_v32  ;;  %v2065_v26 = vld [vmem:[#allocation10 + $0x50] sm:$0xff]  ;;  %v2067_v32 = vld [vmem:[#allocation10 + $0x60] sm:$0xff] }
 0x780   :  { %3033 = vrcp.f32 %v1829_v29  ;;  %v2066_v29 = vld [vmem:[#allocation10 + $0x58] sm:$0xff] }
 0x781   :  { %3035 = vrcp.f32 %v1836_v54  ;;  %v2070_v54 = vld [vmem:[#allocation10 + $0x78] sm:$0xff] }
 0x789   :  { %v3032_v40 = vpop.eup %3031 }
 0x78a   :  { %v3034_v44 = vpop.eup %3033  ;;  %v1840_v48 = vmul.f32 %v3032_v40, %v3030_v36  ;;  %v2843_v36 = vpack.c.bf16 %v2066_v29, %v2065_v26  ;;  %v2068_v40 = vld [vmem:[#allocation10 + $0x68] sm:$0xff] }
 0x78b   :  { %v1839_v58 = vmul.f32 %v3034_v44, %v3743_v34  ;;  %v3036_v4 = vpop.eup %3035  ;;  %v2846_v44 = vpack.c.bf16 %v2068_v40, %v2067_v32 }
 0x78d   :  { %v1841_v62 = vadd.f32 %v1840_v48, %v1839_v58  ;;  %v2069_v48 = vld [vmem:[#allocation10 + $0x70] sm:$0xff] }
 0x78e   :  { %v2849_v58 = vpack.c.bf16 %v2070_v54, %v2069_v48 }
 0x78f   :  { %3037 = vtanh.f32 %v1841_v62 }
 0x799   :  { %v3038_v9 = vpop.eup %3037 }
 0x79a   :  { %v3789_v14 = vmul.f32 %v3038_v9, %v3036_v4  ;;  %v3807_v4 = vstv %s3845_s5 }
 0x79c   :  { %1932 = vmatmul.mubr.f32.vlgmr.msra.gmra.mrb[14].mxu0 %v3789_v14  ;;  %2003 = vmatmul.mubr.f32.vlgmr.msra.gmra.mrb[14].mxu1 %v3789_v14  ;;  %v1844_v18 = vmul.f32 %v3504_v39, %v3789_v14 }
 0x79d   :  { %2829 = vmatpush3.bf16.msra.mxu0 %v2828_v47  ;;  %2248 = vmatprep.mubr.msk.f32.mxu0 %vm3217_vm0, %v3215_v0 }
 0x79e   :  { %1845 = vadd.xlane.f32.xlu0 %v1844_v18  ;;  %2830 = vmatprep.subr.bf16.mxu0 %v3216_v50 }
 0x7a1   :  { %2832 = vmatpush3.bf16.msra.mxu0 %v2831_v60 }
 0x7a2   :  { %2833 = vmatprep.subr.bf16.mxu0 %v3216_v50 }
 0x7a5   :  { %2835 = vmatpush3.bf16.msra.mxu0 %v2834_v6 }
 0x7a6   :  { %2836 = vmatprep.subr.bf16.mxu0 %v3216_v50 }
 0x86f   :  { %v1933_v22 = vpop.f32.mrb[14].mxu0  ;;  %v2004_v25 = vpop.f32.mrb[14].mxu1 }
 0x870   :  { %v2865_v27 = vadd.f32 %v1933_v22, %v3486_v35  ;;  %v1935_v8 = vpop.f32.mrb[15].mxu0  ;;  %v2006_v28 = vpop.f32.mrb[15].mxu1  ;;  %v2881_v38 = vadd.f32 %v2004_v25, %v3495_v1 }
 0x871   :  { %v2866_v30 = vadd.f32 %v1935_v8, %v3488_v37  ;;  %v2882_v45 = vadd.f32 %v2006_v28, %v3492_v57  ;;  %v1074_v25 = vpop.xlane.xlu1 %1073 }
 0x872   :  { %v2195_v33 = vmul.f32 -1.442695, %v2865_v27  ;;  %v1075_v28 = vadd.f32 %v1074_v25, %v3807_v4 }
 0x873   :  { %v2196_v43 = vmul.f32 -1.442695, %v2866_v30  ;;  %v2197_v31 = vmul.f32 -1.442695, %v2882_v45 }
 0x874   :  { %3039 = vpow2.f32 %v2195_v33 }
 0x875   :  { %3041 = vpow2.f32 %v2196_v43  ;;  %v1267_v43 = vpop.xlane.xlu1 %1266 }
 0x876   :  { %3043 = vpow2.f32 %v2197_v31 }
 0x877   :  { %3045 = vtanh.f32 %v2881_v38 }
 0x87e   :  { %v3040_v51 = vpop.eup %3039 }
 0x87f   :  { %v3042_v41 = vpop.eup %3041  ;;  %v2016_v55 = vadd.f32 1.0, %v3040_v51  ;;  %v1268_v51 = vadd.f32 %v1267_v43, %v3807_v4 }
 0x880   :  { %v2022_v59 = vadd.f32 1.0, %v3042_v41  ;;  %v3044_v35 = vpop.eup %3043 }
 0x881   :  { %3047 = vrcp.f32 %v2016_v55  ;;  %v3046_v61 = vpop.eup %3045  ;;  %v2029_v7 = vadd.f32 1.0, %v3044_v35 }
 0x882   :  { %3049 = vrcp.f32 %v2022_v59 }
 0x883   :  { %3051 = vrcp.f32 %v2029_v7 }
 0x88b   :  { %v3048_v37 = vpop.eup %3047 }
 0x88c   :  { %v3050_v5 = vpop.eup %3049  ;;  %v2033_v49 = vmul.f32 %v3048_v37, %v3046_v61 }
 0x88d   :  { %v2032_v11 = vmul.f32 %v3050_v5, %v1841_v62  ;;  %v3052_v57 = vpop.eup %3051  ;;  %v689_v62 = vpop.xlane.xlu0 %688 }
 0x88e   :  { %v691_v18 = vadd.f32 %v3807_v4, %v689_v62 }
 0x88f   :  { %v2034_v15 = vadd.f32 %v2033_v49, %v2032_v11 }
 0x890   :  { %v692_v22 = vsub.f32 -inf, %v691_v18  ;;  %v695_v30 = vsub.f32 %v691_v18, %v691_v18 }
 0x891   :  { %3053 = vtanh.f32 %v2034_v15  ;;  %v881_v9 = vpop.xlane.xlu0 %880  ;;  %v1653_v15 = vpop.xlane.xlu1 %1652 }
 0x892   :  { %v882_v0 = vadd.f32 %v881_v9, %v3807_v4  ;;  %v693_v8 = vmul.f32 1.442695, %v692_v22  ;;  %v696_v31 = vmul.f32 1.442695, %v695_v30  ;;  %v1654_v24 = vadd.f32 %v1653_v15, %v3807_v4 }
 0x894   :  { %v883_v27 = vmax.f32 %v691_v18, %v882_v0  ;;  %3055 = vpow2.f32 %v693_v8 }
 0x895   :  { %3057 = vpow2.f32 %v696_v31  ;;  %v1460_v59 = vpop.xlane.xlu0 %1459 }
 0x896   :  { %v884_v33 = vsub.f32 %v691_v18, %v883_v27  ;;  %v1076_v45 = vmax.f32 %v883_v27, %v1075_v28  ;;  %v887_v41 = vsub.f32 %v882_v0, %v883_v27  ;;  %v1461_v5 = vadd.f32 %v1460_v59, %v3807_v4 }
 0x898   :  { %v885_v38 = vmul.f32 1.442695, %v884_v33  ;;  %v1077_v55 = vsub.f32 %v883_v27, %v1076_v45  ;;  %v1269_v35 = vmax.f32 %v1076_v45, %v1268_v51  ;;  %v888_v61 = vmul.f32 1.442695, %v887_v41 }
 0x899   :  { %v1080_v49 = vsub.f32 %v1075_v28, %v1076_v45  ;;  %v1846_v63 = vpop.xlane.xlu0 %1845 }
 0x89a   :  { %3059 = vpow2.f32 %v885_v38  ;;  %v1078_v37 = vmul.f32 1.442695, %v1077_v55  ;;  %v1270_v11 = vsub.f32 %v1076_v45, %v1269_v35 }
 0x89b   :  { %v3054_v1 = vpop.eup %3053  ;;  %3061 = vpow2.f32 %v888_v61 }
 0x89c   :  { %v3799_v34 = vmul.f32 %v3054_v1, %v3052_v57  ;;  %3063 = vpow2.f32 %v1078_v37  ;;  %v1462_v57 = vmax.f32 %v1269_v35, %v1461_v5  ;;  %v1271_v20 = vmul.f32 1.442695, %v1270_v11 }
 0x89e   :  { %v2037_v17 = vmul.f32 %v3504_v39, %v3799_v34  ;;  %v2062_v39 = vld [vmem:[#allocation10 + $0x38] sm:$0xff]  ;;  %v3056_v7 = vpop.eup %3055  ;;  %v1463_v56 = vsub.f32 %v1269_v35, %v1462_v57  ;;  %v1655_v3 = vmax.f32 %v1462_v57, %v1654_v24  ;;  %v1466_v19 = vsub.f32 %v1461_v5, %v1462_v57 }
 0x89f   :  { %v2837_v13 = vpack.c.bf16 %v2062_v39, %v2061_v10  ;;  %v698_v1 = vmul.f32 0.0, %v3056_v7  ;;  %v3058_v47 = vpop.eup %3057 }
 0x8a0   :  { %2038 = vadd.xlane.f32.xlu1 %v2037_v17  ;;  %v1081_v17 = vmul.f32 1.442695, %v1080_v49  ;;  %v1464_v39 = vmul.f32 1.442695, %v1463_v56  ;;  %v700_v26 = vmul.f32 %v3058_v47, %v3506_v42  ;;  %v1656_v29 = vsub.f32 %v1462_v57, %v1655_v3 }
 0x8a1   :  { %2838 = vmatpush3.bf16.msra.mxu0 %v2837_v13  ;;  %v699_v60 = vadd.f32 %v3058_v47, %v698_v1  ;;  %v1847_v13 = vadd.f32 %v1846_v63, %v3807_v4  ;;  %v1659_v62 = vsub.f32 %v1654_v24, %v1655_v3 }
 0x8a2   :  { %2839 = vmatprep.subr.bf16.mxu0 %v3216_v50  ;;  %3065 = vpow2.f32 %v1081_v17  ;;  %v701_v48 = vadd.f32 %v700_v26, %v698_v1  ;;  %v1657_v54 = vmul.f32 1.442695, %v1656_v29 }
 0x8a3   :  { %3067 = vpow2.f32 %v1271_v20  ;;  %v1660_v27 = vmul.f32 1.442695, %v1659_v62 }
 0x8a4   :  { %v3060_v53 = vpop.eup %3059 }
 0x8a5   :  { %2841 = vmatpush3.bf16.msra.mxu0 %v2840_v23  ;;  %v890_v6 = vmul.f32 %v3060_v53, %v699_v60  ;;  %v3062_v16 = vpop.eup %3061  ;;  %v892_v18 = vmul.f32 %v3060_v53, %v701_v48 }
 0x8a6   :  { %2842 = vmatprep.subr.bf16.mxu0 %v3216_v50  ;;  %v3064_v23 = vpop.eup %3063  ;;  %v893_v0 = vmul.f32 %v3062_v16, %v3554_v46 }
 0x8a7   :  { %v891_v32 = vadd.f32 %v3062_v16, %v890_v6 }
 0x8a8   :  { %v894_v8 = vadd.f32 %v893_v0, %v892_v18 }
 0x8a9   :  { %2844 = vmatpush3.bf16.msra.mxu0 %v2843_v36  ;;  %v1848_v36 = vmax.f32 %v1655_v3, %v1847_v13  ;;  %v1083_v40 = vmul.f32 %v3064_v23, %v891_v32 }
 0x8aa   :  { %2845 = vmatprep.subr.bf16.mxu0 %v3216_v50  ;;  %v1085_v43 = vmul.f32 %v3064_v23, %v894_v8 }
 0x8ab   :  { %v1849_v22 = vsub.f32 %v1655_v3, %v1848_v36  ;;  %v1852_v31 = vsub.f32 %v1847_v13, %v1848_v36 }
 0x8ad   :  { %2847 = vmatpush3.bf16.msra.mxu0 %v2846_v44  ;;  %v1467_v44 = vmul.f32 1.442695, %v1466_v19  ;;  %v1850_v28 = vmul.f32 1.442695, %v1849_v22  ;;  %v1853_v59 = vmul.f32 1.442695, %v1852_v31 }
 0x8ae   :  { %2848 = vmatprep.subr.bf16.mxu0 %v3216_v50  ;;  %v1273_v50 = vsub.f32 %v1268_v51, %v1269_v35 }
 0x8b0   :  { %v1274_v10 = vmul.f32 1.442695, %v1273_v50 }
 0x8b1   :  { %2850 = vmatpush3.bf16.msra.mxu0 %v2849_v58  ;;  %v3066_v58 = vpop.eup %3065 }
 0x8b2   :  { %3069 = vpow2.f32 %v1274_v10  ;;  %v3068_v9 = vpop.eup %3067  ;;  %v1084_v25 = vadd.f32 %v3066_v58, %v1083_v40  ;;  %v1086_v45 = vmul.f32 %v3066_v58, %v3602_v52 }
 0x8b3   :  { %3071 = vpow2.f32 %v1464_v39 }
 0x8b4   :  { %3073 = vpow2.f32 %v1467_v44  ;;  %v1276_v42 = vmul.f32 %v3068_v9, %v1084_v25  ;;  %v1087_v55 = vadd.f32 %v1086_v45, %v1085_v43 }
 0x8b5   :  { %3075 = vpow2.f32 %v1657_v54 }
 0x8b6   :  { %3077 = vpow2.f32 %v1660_v27  ;;  %v1278_v5 = vmul.f32 %v3068_v9, %v1087_v55 }
 0x8b7   :  { %3079 = vpow2.f32 %v1850_v28 }
 0x8b8   :  { %3081 = vpow2.f32 %v1853_v59 }
 0x8bc   :  { %v3070_v30 = vpop.eup %3069 }
 0x8bd   :  { %v3072_v33 = vpop.eup %3071  ;;  %v1277_v38 = vadd.f32 %v3070_v30, %v1276_v42  ;;  %v1279_v49 = vmul.f32 %v3070_v30, %v3650_v2 }
 0x8be   :  { %v3074_v61 = vpop.eup %3073 }
 0x8bf   :  { %v1469_v41 = vmul.f32 %v3072_v33, %v1277_v38  ;;  %v3076_v37 = vpop.eup %3075  ;;  %v1280_v17 = vadd.f32 %v1279_v49, %v1278_v5  ;;  %v1472_v47 = vmul.f32 %v3074_v61, %v3698_v12 }
 0x8c0   :  { %v3078_v20 = vpop.eup %3077 }
 0x8c1   :  { %v1470_v15 = vadd.f32 %v3074_v61, %v1469_v41  ;;  %v1471_v24 = vmul.f32 %v3072_v33, %v1280_v17  ;;  %v1665_v63 = vmul.f32 %v3078_v20, %v3746_v21  ;;  %v2198_v21 = vld [vmem:[%s3847_s7] ss:$0 sm:$0xff] }
 0x8c3   :  { %v1662_v1 = vmul.f32 %v3076_v37, %v1470_v15  ;;  %v1473_v56 = vadd.f32 %v1472_v47, %v1471_v24 }
 0x8c5   :  { %v1663_v50 = vadd.f32 %v3078_v20, %v1662_v1  ;;  %v1664_v2 = vmul.f32 %v3076_v37, %v1473_v56 }
 0x8c7   :  { %v1666_v13 = vadd.f32 %v1665_v63, %v1664_v2 }
 0x92d   :  { %v2039_v51 = vpop.xlane.xlu1 %2038 }
 0x92e   :  { %v2040_v46 = vadd.f32 %v2039_v51, %v3807_v4  ;;  %v3080_v4 = vpop.eup %3079 }
 0x92f   :  { %v1855_v53 = vmul.f32 %v3080_v4, %v1663_v50  ;;  %v3082_v60 = vpop.eup %3081  ;;  %v1857_v23 = vmul.f32 %v3080_v4, %v1666_v13 }
 0x930   :  { %v2041_v35 = vmax.f32 %v1848_v36, %v2040_v46  ;;  %v1858_v19 = vmul.f32 %v3082_v60, %v3789_v14 }
 0x931   :  { %v1856_v3 = vadd.f32 %v3082_v60, %v1855_v53 }
 0x932   :  { %v2042_v7 = vsub.f32 %v1848_v36, %v2041_v35  ;;  %v2045_v11 = vsub.f32 %v2040_v46, %v2041_v35  ;;  %v1859_v26 = vadd.f32 %v1858_v19, %v1857_v23 }
 0x934   :  { %v2043_v52 = vmul.f32 1.442695, %v2042_v7  ;;  %v2046_v57 = vmul.f32 1.442695, %v2045_v11 }
 0x936   :  { %3083 = vpow2.f32 %v2043_v52 }
 0x937   :  { %3085 = vpow2.f32 %v2046_v57 }
 0x940   :  { %v3084_v6 = vpop.eup %3083 }
 0x941   :  { %v2048_v10 = vmul.f32 %v3084_v6, %v1856_v3  ;;  %v3086_v39 = vpop.eup %3085  ;;  %v2050_v12 = vmul.f32 %v3084_v6, %v1859_v26 }
 0x942   :  { %v2051_v29 = vmul.f32 %v3086_v39, %v3799_v34 }
 0x943   :  { %v2049_v16 = vadd.f32 %v3086_v39, %v2048_v10 }
 0x944   :  { %v2052_v32 = vadd.f32 %v2051_v29, %v2050_v12 }
 0x945   :  { %3087 = vrcp.f32 %v2049_v16 }
 0x94f   :  { %v3088_v36 = vpop.eup %3087 }
 0x950   :  { %v2054_v40 = vmul.f32 %v3088_v36, %v2052_v32 }
 0x952   :  { %2249 = vmatmul.mubr.f32.vlgmr.msra.gmra.mrb[16].mxu0 %v2054_v40 }
 0xa25   :  { %v2144_v44 = vpop.f32.mrb[16].mxu0 }
 0xa26   :  { %v2145_v48 = vadd.f32 %v2198_v21, %v2144_v44  ;;  %v2250_v54 = vpop.f32.mrb[17].mxu0 }
 0xa28   :  { %2148 = vst [vmem:[#allocation12] sm:$0xff] %v2145_v48 }
 0xa29   :  { %3188 = shalt.err (!%p3185_p8)
}
 0xa2a   :  { %s3189_s21 = scalar_lea.hbm %s3848_s8, 128 }
 0xa2b   :  { %p3190_p9 = scmp.ne.s32.totalorder %s3848_s8, %s3189_s21  ;;  %p3193_p10 = scmp.lt.u32.totalorder %s3189_s21, %s3848_s8 }
 0xa2d   :  { %p3195_p11 = pnand %p3193_p10, %p3190_p9 }
 0xa2f   :  { %3198 = shalt.err (!%p3195_p11)
}
 0xa30   :  { %2158 = dma.vmem_to_hbm [thread:$0]  %s2156_s14, 128, %s3848_s8, [#allocation6]  }
 0xa31   :  { %3205 = dma.done.wait [#allocation6], 128  }
 0xa32   :  { %3206 = vsyncadd [#allocation6], 4294967168 }
 0xa33   :  { %2162 = vsyncpa [#allocation5], 1 }
 0xa34   :  { %2163 = vsyncpa [#allocation8], 1 }
 0xa35   :  { %2164 = vsyncpa [#allocation11], 1 }
 0xa36   :  { %2165 = vsyncpa [#allocation6], 1 }

</bundles_post_ra>
